<compile_context>
chip_gen: v7x
topology: tpu7x:2x2x1
jax: 0.10.0
libtpu: 0.0.40
codegen_flags: <defaults>
</compile_context>

<pallas_src>
import math
import functools

import jax
import jax.numpy as jnp
from jax.experimental import pallas as pl
from jax.experimental.pallas import tpu as pltpu


# ---------------------------------------------------------------------------
# helpers
# ---------------------------------------------------------------------------
def _layernorm(x, gamma, beta, eps=1e-5):
    mu = jnp.mean(x, axis=-1, keepdims=True)
    var = jnp.mean((x - mu) ** 2, axis=-1, keepdims=True)
    return (x - mu) * jax.lax.rsqrt(var + eps) * gamma + beta


# ---------------------------------------------------------------------------
# Pallas kernel: the full encoder stack (grid axis = layers, activations
# resident in VMEM via a constant-index output block)
# ---------------------------------------------------------------------------
def encoder_stack_kernel(
    x_ref, mask_ref,
    wqkv_ref, bqkv_ref, wo_ref, bo_ref, g1_ref, be1_ref,
    w1_ref, bf1_ref, w2_ref, bf2_ref, g2_ref, be2_ref,
    out_ref,
    *, B, S, H, n_heads, head_dim,
):
    layer = pl.program_id(0)

    # Layer 0: initialize the resident activation slab from the embeddings.
    @pl.when(layer == 0)
    def _():
        out_ref[...] = x_ref[...]

    x = out_ref[...]                                        # (B*S, H) f32

    # Hoisted mask work: compare + broadcast once (not per head).
    neg_mask = jnp.broadcast_to(mask_ref[...] == 0.0, (B, S, S))

    inv_scale = jnp.float32(1.0 / math.sqrt(head_dim))

    # --- fused QKV projection (one MXU matmul, bf16 operands, f32 acc) ------
    qkv = (jnp.dot(x.astype(jnp.bfloat16), wqkv_ref[0],
                   preferred_element_type=jnp.float32) + bqkv_ref[0])
    q = qkv[:, :H] * inv_scale                              # pre-scaled q
    k = qkv[:, H:2 * H]
    v = qkv[:, 2 * H:]

    # --- multi-head self attention: per head, batched over B ----------------
    ctx_heads = []
    for h in range(n_heads):
        lo = h * head_dim
        qh = q[:, lo:lo + head_dim].reshape(B, S, head_dim).astype(jnp.bfloat16)
        kh = k[:, lo:lo + head_dim].reshape(B, S, head_dim).astype(jnp.bfloat16)
        vh = v[:, lo:lo + head_dim].reshape(B, S, head_dim).astype(jnp.bfloat16)
        energy = jnp.einsum('bqd,bkd->bqk', qh, kh,
                            preferred_element_type=jnp.float32)      # (B,S,S)
        energy = jnp.where(neg_mask, jnp.float32(-1e10), energy)
        m = jnp.max(energy, axis=-1, keepdims=True)
        p = jnp.exp(energy - m)
        attn = p * pl.reciprocal(jnp.sum(p, axis=-1, keepdims=True),
                                 approx=True)
        ch = jnp.einsum('bqk,bkd->bqd', attn.astype(jnp.bfloat16), vh,
                        preferred_element_type=jnp.float32)          # (B,S,hd)
        ctx_heads.append(ch.reshape(B * S, head_dim))
    ctx = jnp.concatenate(ctx_heads, axis=-1)               # (B*S, H), in regs

    attn_out = (jnp.dot(ctx.astype(jnp.bfloat16), wo_ref[0],
                        preferred_element_type=jnp.float32) + bo_ref[0])

    # residual + layernorm (f32)
    x1 = _layernorm(x + attn_out, g1_ref[0], be1_ref[0])

    # --- position-wise feed-forward ------------------------------------------
    h1 = jnp.maximum(
        jnp.dot(x1.astype(jnp.bfloat16), w1_ref[0],
                preferred_element_type=jnp.float32) + bf1_ref[0], 0.0)
    ff = (jnp.dot(h1.astype(jnp.bfloat16), w2_ref[0],
                  preferred_element_type=jnp.float32) + bf2_ref[0])

    # residual + layernorm; written every step, flushed to HBM once at the end
    out_ref[...] = _layernorm(x1 + ff, g2_ref[0], be2_ref[0])


# ---------------------------------------------------------------------------
# Wrapper: one pallas_call for the whole layer stack
# ---------------------------------------------------------------------------
_WEIGHT_ORDER = ("wqkv", "bqkv", "wo", "bo", "g1", "be1",
                 "w1", "bf1", "w2", "bf2", "g2", "be2")
_BF16_WEIGHTS = ("wqkv", "wo", "w1", "w2")      # MXU operands -> bf16


def encoder_stack(x_flat, mask, params, n_heads, B, S, H):
    n_layers = params["wqkv"].shape[0]
    head_dim = H // n_heads
    BS = B * S

    weights = []
    for name in _WEIGHT_ORDER:
        w = params[name]
        if name in _BF16_WEIGHTS:
            w = w.astype(jnp.bfloat16)
        weights.append(w)

    def _wspec(p):
        ndim = p.ndim
        return pl.BlockSpec((1,) + p.shape[1:],
                            lambda l: (l,) + (0,) * (ndim - 1))

    in_specs = (
        [pl.BlockSpec((BS, H), lambda l: (0, 0)),           # embeddings (used @ l==0)
         pl.BlockSpec(mask.shape, lambda l: (0, 0, 0))]     # (B,1,S) key mask
        + [_wspec(w) for w in weights]
    )
    # Constant block index across the layer axis -> activation slab stays in
    # VMEM for the whole stack; single lane-dense HBM writeback at the end.
    out_specs = pl.BlockSpec((BS, H), lambda l: (0, 0))

    kernel = functools.partial(encoder_stack_kernel, B=B, S=S, H=H,
                               n_heads=n_heads, head_dim=head_dim)

    return pl.pallas_call(
        kernel,
        out_shape=jax.ShapeDtypeStruct((BS, H), jnp.float32),
        grid_spec=pltpu.PrefetchScalarGridSpec(
            num_scalar_prefetch=0,
            grid=(n_layers,),
            in_specs=in_specs,
            out_specs=out_specs,
        ),
        compiler_params=pltpu.CompilerParams(
            dimension_semantics=("arbitrary",)),
    )(x_flat, mask, *weights)


# ---------------------------------------------------------------------------
# Full Encoder forward (default path: is_discriminator=False, if_req=False)
# ---------------------------------------------------------------------------
def encoder_forward(src, src_mask, params, n_heads):
    """src: (B, S) int32 token ids, src_mask: (B, 1, 1, S) float mask."""
    B, S = src.shape
    H = params["tok_emb"].shape[1]

    # embeddings (glue, plain JAX gather) + scale + positional embedding
    pos = jnp.arange(S)
    x = (params["tok_emb"][src] * jnp.float32(math.sqrt(H))
         + params["pos_emb"][pos][None, :, :]).astype(jnp.float32)  # (B,S,H)

    mask = src_mask[:, 0, :, :].astype(jnp.float32)                 # (B,1,S)

    out = encoder_stack(x.reshape(B * S, H), mask, params, n_heads, B, S, H)
    return out.reshape(B, S, H)
    # TODO(synk): discriminator head (self.ffn(src__.mean(dim=1))) and the
    # if_req dense-embedding path are not exercised by the default forward.


# ---------------------------------------------------------------------------
# Pure-JAX reference (for correctness check)
# ---------------------------------------------------------------------------
def encoder_reference(src, src_mask, params, n_heads):
    B, S = src.shape
    H = params["tok_emb"].shape[1]
    hd = H // n_heads
    L = params["wqkv"].shape[0]

    x = (params["tok_emb"][src] * jnp.float32(math.sqrt(H))
         + params["pos_emb"][jnp.arange(S)][None, :, :]).astype(jnp.float32)
    mask = src_mask[:, 0, 0, :]                                     # (B, S)

    for l in range(L):
        qkv = x @ params["wqkv"][l] + params["bqkv"][l][0]
        q, k, v = qkv[..., :H], qkv[..., H:2 * H], qkv[..., 2 * H:]

        def split(t):
            return t.reshape(B, S, n_heads, hd).transpose(0, 2, 1, 3)

        qh, kh, vh = split(q), split(k), split(v)
        energy = jnp.einsum('bhqd,bhkd->bhqk', qh, kh) / jnp.float32(math.sqrt(hd))
        energy = jnp.where(mask[:, None, None, :] == 0, -1e10, energy)
        attn = jax.nn.softmax(energy, axis=-1)
        ctx = jnp.einsum('bhqk,bhkd->bhqd', attn, vh)
        ctx = ctx.transpose(0, 2, 1, 3).reshape(B, S, H)
        attn_out = ctx @ params["wo"][l] + params["bo"][l][0]
        x1 = _layernorm(x + attn_out, params["g1"][l][0], params["be1"][l][0])
        h1 = jax.nn.relu(x1 @ params["w1"][l] + params["bf1"][l][0])
        ff = h1 @ params["w2"][l] + params["bf2"][l][0]
        x = _layernorm(x1 + ff, params["g2"][l][0], params["be2"][l][0])
    return x


# ---------------------------------------------------------------------------
# Deterministic parameter init (weights pre-stacked over layers)
# ---------------------------------------------------------------------------
def init_params(key, input_dim, hid_dim, n_layers, pf_dim, max_length):
    def nrm(k, shape, s=0.02):
        return (s * jax.random.normal(k, shape)).astype(jnp.float32)

    H, P, L = hid_dim, pf_dim, n_layers
    keys = jax.random.split(key, 10)
    return {
        "tok_emb": nrm(keys[0], (input_dim, H)),
        "pos_emb": nrm(keys[1], (max_length, H)),
        "wqkv": nrm(keys[2], (L, H, 3 * H)),
        "bqkv": nrm(keys[3], (L, 1, 3 * H)),
        "wo":   nrm(keys[4], (L, H, H)),
        "bo":   nrm(keys[5], (L, 1, H)),
        "g1":   jnp.ones((L, 1, H), jnp.float32),
        "be1":  jnp.zeros((L, 1, H), jnp.float32),
        "w1":   nrm(keys[6], (L, H, P)),
        "bf1":  nrm(keys[7], (L, 1, P)),
        "w2":   nrm(keys[8], (L, P, H)),
        "bf2":  nrm(keys[9], (L, 1, H)),
        "g2":   jnp.ones((L, 1, H), jnp.float32),
        "be2":  jnp.zeros((L, 1, H), jnp.float32),
    }


# ---------------------------------------------------------------------------
if __name__ == "__main__":
    input_dim = 50      # vocab size
    hid_dim = 32
    n_layers = 2
    n_heads = 4
    pf_dim = 64
    max_length = 20

    B, S = 2, 8

    key = jax.random.PRNGKey(0)
    k_param, k_src = jax.random.split(key)

    params = init_params(k_param, input_dim, hid_dim, n_layers, pf_dim,
                         max_length)

    src = jax.random.randint(k_src, (B, S), 0, input_dim, dtype=jnp.int32)
    # padding mask: batch 0 has 8 valid tokens, batch 1 has 6
    lengths = jnp.array([8, 6], dtype=jnp.int32)
    valid = (jnp.arange(S)[None, :] < lengths[:, None]).astype(jnp.float32)
    src_mask = valid[:, None, None, :]                         # (B, 1, 1, S)

    out = encoder_forward(src, src_mask, params, n_heads)
    jax.block_until_ready(out)

    assert out.shape == (B, S, hid_dim)
    assert jnp.all(jnp.isfinite(out))

    # correctness vs pure-JAX reference (loose tol: bf16 MXU operands)
    ref = encoder_reference(src, src_mask, params, n_heads)
    max_err = float(jnp.max(jnp.abs(out - ref)))
    assert max_err < 0.1, f"max abs err {max_err}"

    print("KERNEL_OK")
</pallas_src>

<mosaic_0001>
module attributes {stable_mosaic.version = 11 : i64} {
  func.func @encoder_stack_kernel(%arg0: i32, %arg1: memref<16x32xf32, #tpu.memory_space<vmem>>, %arg2: memref<2x1x8xf32, #tpu.memory_space<vmem>>, %arg3: memref<1x32x96xbf16, #tpu.memory_space<vmem>>, %arg4: memref<1x1x96xf32, #tpu.memory_space<vmem>>, %arg5: memref<1x32x32xbf16, #tpu.memory_space<vmem>>, %arg6: memref<1x1x32xf32, #tpu.memory_space<vmem>>, %arg7: memref<1x1x32xf32, #tpu.memory_space<vmem>>, %arg8: memref<1x1x32xf32, #tpu.memory_space<vmem>>, %arg9: memref<1x32x64xbf16, #tpu.memory_space<vmem>>, %arg10: memref<1x1x64xf32, #tpu.memory_space<vmem>>, %arg11: memref<1x64x32xbf16, #tpu.memory_space<vmem>>, %arg12: memref<1x1x32xf32, #tpu.memory_space<vmem>>, %arg13: memref<1x1x32xf32, #tpu.memory_space<vmem>>, %arg14: memref<1x1x32xf32, #tpu.memory_space<vmem>>, %arg15: memref<16x32xf32, #tpu.memory_space<vmem>>) attributes {dimension_semantics = [#tpu.dimension_semantics<arbitrary>], iteration_bounds = array<i64: 2>, scalar_prefetch = 0 : i64, scratch_operands = 0 : i64, tpu.core_type = #tpu.core_type<tc>, window_params = [{pipeline_mode = #tpu.pipeline_mode<synchronous>, transform_indices = @transform_0, window_bounds = array<i64: 16, 32>}, {pipeline_mode = #tpu.pipeline_mode<synchronous>, transform_indices = @transform_1, window_bounds = array<i64: 2, 1, 8>}, {transform_indices = @transform_2, window_bounds = array<i64: 1, 32, 96>}, {transform_indices = @transform_3, window_bounds = array<i64: 1, 1, 96>}, {transform_indices = @transform_4, window_bounds = array<i64: 1, 32, 32>}, {transform_indices = @transform_5, window_bounds = array<i64: 1, 1, 32>}, {transform_indices = @transform_6, window_bounds = array<i64: 1, 1, 32>}, {transform_indices = @transform_7, window_bounds = array<i64: 1, 1, 32>}, {transform_indices = @transform_8, window_bounds = array<i64: 1, 32, 64>}, {transform_indices = @transform_9, window_bounds = array<i64: 1, 1, 64>}, {transform_indices = @transform_10, window_bounds = array<i64: 1, 64, 32>}, {transform_indices = @transform_11, window_bounds = array<i64: 1, 1, 32>}, {transform_indices = @transform_12, window_bounds = array<i64: 1, 1, 32>}, {transform_indices = @transform_13, window_bounds = array<i64: 1, 1, 32>}, {pipeline_mode = #tpu.pipeline_mode<synchronous>, transform_indices = @transform_14, window_bounds = array<i64: 16, 32>}]} {
    %c0_i32 = arith.constant 0 : i32
    %0 = arith.cmpi eq, %arg0, %c0_i32 : i32
    %1 = arith.extui %0 : i1 to i32
    %c0_i32_0 = arith.constant 0 : i32
    %2 = arith.cmpi ne, %1, %c0_i32_0 : i32
    scf.if %2 {
      %c0_79 = arith.constant 0 : index
      %c0_80 = arith.constant 0 : index
      %204 = vector.load %arg1[%c0_79, %c0_80] : memref<16x32xf32, #tpu.memory_space<vmem>>, vector<16x32xf32>
      %c0_81 = arith.constant 0 : index
      %c0_82 = arith.constant 0 : index
      %205 = vector.load %arg15[%c0_81, %c0_82] : memref<16x32xf32, #tpu.memory_space<vmem>>, vector<16x32xf32>
      tpu.vector_store %arg15[%c0_81, %c0_82], %204 {strides = array<i32>} : memref<16x32xf32, #tpu.memory_space<vmem>>, vector<16x32xf32>,
    } else {
    }
    %c0 = arith.constant 0 : index
    %c0_1 = arith.constant 0 : index
    %3 = vector.load %arg15[%c0, %c0_1] : memref<16x32xf32, #tpu.memory_space<vmem>>, vector<16x32xf32>
    %c0_2 = arith.constant 0 : index
    %c0_3 = arith.constant 0 : index
    %c0_4 = arith.constant 0 : index
    %4 = vector.load %arg2[%c0_2, %c0_3, %c0_4] : memref<2x1x8xf32, #tpu.memory_space<vmem>>, vector<2x1x8xf32>
    %cst = arith.constant 0.000000e+00 : f32
    %5 = vector.broadcast %cst : f32 to vector<2x1x8xf32>
    %6 = arith.cmpf oeq, %4, %5 : vector<2x1x8xf32>
    %7 = vector.shape_cast %6 : vector<2x1x8xi1> to vector<2x1x8xi1>
    %8 = vector.broadcast %7 : vector<2x1x8xi1> to vector<2x8x8xi1>
    %9 = arith.truncf %3 : vector<16x32xf32> to vector<16x32xbf16>
    %c0_5 = arith.constant 0 : index
    %c0_6 = arith.constant 0 : index
    %c0_7 = arith.constant 0 : index
    %10 = vector.load %arg3[%c0_5, %c0_6, %c0_7] : memref<1x32x96xbf16, #tpu.memory_space<vmem>>, vector<1x32x96xbf16>
    %11 = vector.shape_cast %10 : vector<1x32x96xbf16> to vector<32x96xbf16>
    %cst_8 = arith.constant dense<0.000000e+00> : vector<16x96xf32>
    %12 = tpu.matmul %9, %11, %cst_8 {dimension_numbers = #tpu.dot_dimension_numbers<[1], [0], [0], [1], [0, 0, 1, 1], [], []>} : vector<16x32xbf16>, vector<32x96xbf16>, vector<16x96xf32> -> vector<16x96xf32>
    %c0_9 = arith.constant 0 : index
    %c0_10 = arith.constant 0 : index
    %c0_11 = arith.constant 0 : index
    %13 = vector.load %arg4[%c0_9, %c0_10, %c0_11] : memref<1x1x96xf32, #tpu.memory_space<vmem>>, vector<1x1x96xf32>
    %14 = vector.shape_cast %13 : vector<1x1x96xf32> to vector<1x96xf32>
    %15 = vector.broadcast %14 : vector<1x96xf32> to vector<16x96xf32>
    %16 = arith.addf %12, %15 : vector<16x96xf32>
    %17 = vector.extract_strided_slice %16 {offsets = [0, 0], sizes = [16, 32], strides = [1, 1]} : vector<16x96xf32> to vector<16x32xf32>
    %cst_12 = arith.constant 0.353553385 : f32
    %18 = vector.broadcast %cst_12 : f32 to vector<16x32xf32>
    %19 = arith.mulf %17, %18 : vector<16x32xf32>
    %20 = vector.extract_strided_slice %16 {offsets = [0, 32], sizes = [16, 32], strides = [1, 1]} : vector<16x96xf32> to vector<16x32xf32>
    %21 = vector.extract_strided_slice %16 {offsets = [0, 64], sizes = [16, 32], strides = [1, 1]} : vector<16x96xf32> to vector<16x32xf32>
    %22 = vector.extract_strided_slice %19 {offsets = [0, 0], sizes = [16, 8], strides = [1, 1]} : vector<16x32xf32> to vector<16x8xf32>
    %23 = vector.shape_cast %22 : vector<16x8xf32> to vector<2x8x8xf32>
    %24 = arith.truncf %23 : vector<2x8x8xf32> to vector<2x8x8xbf16>
    %25 = vector.extract_strided_slice %20 {offsets = [0, 0], sizes = [16, 8], strides = [1, 1]} : vector<16x32xf32> to vector<16x8xf32>
    %26 = vector.shape_cast %25 : vector<16x8xf32> to vector<2x8x8xf32>
    %27 = arith.truncf %26 : vector<2x8x8xf32> to vector<2x8x8xbf16>
    %28 = vector.extract_strided_slice %21 {offsets = [0, 0], sizes = [16, 8], strides = [1, 1]} : vector<16x32xf32> to vector<16x8xf32>
    %29 = vector.shape_cast %28 : vector<16x8xf32> to vector<2x8x8xf32>
    %30 = arith.truncf %29 : vector<2x8x8xf32> to vector<2x8x8xbf16>
    "tpu.trace_start"() <{level = 10 : i32, message = "bqd,bkd->bqk"}> : () -> ()
    %cst_13 = arith.constant dense<0.000000e+00> : vector<2x8x8xf32>
    %31 = tpu.matmul %24, %27, %cst_13 {dimension_numbers = #tpu.dot_dimension_numbers<[2], [2], [1], [1], [0, 0, 0, 1, 1, 1], [0], [0]>} : vector<2x8x8xbf16>, vector<2x8x8xbf16>, vector<2x8x8xf32> -> vector<2x8x8xf32>
    %cst_14 = arith.constant -1.000000e+10 : f32
    "tpu.trace_stop"() : () -> ()
    %32 = vector.broadcast %cst_14 : f32 to vector<2x8x8xf32>
    %33 = arith.select %8, %32, %31 : vector<2x8x8xi1>, vector<2x8x8xf32>
    %cst_15 = arith.constant dense<0xFF800000> : vector<2x8xf32>
    %34 = vector.multi_reduction <maximumf>, %33, %cst_15 [2] : vector<2x8x8xf32> to vector<2x8xf32>
    %35 = vector.shape_cast %34 : vector<2x8xf32> to vector<2x8x1xf32>
    %36 = vector.broadcast %35 : vector<2x8x1xf32> to vector<2x8x8xf32>
    %37 = arith.subf %33, %36 : vector<2x8x8xf32>
    %38 = math.exp %37 : vector<2x8x8xf32>
    %cst_16 = arith.constant dense<0.000000e+00> : vector<2x8xf32>
    %39 = vector.multi_reduction <add>, %38, %cst_16 [2] : vector<2x8x8xf32> to vector<2x8xf32>
    %40 = vector.shape_cast %39 : vector<2x8xf32> to vector<2x8x1xf32>
    %41 = tpu.reciprocal %40 {approx = true} : vector<2x8x1xf32> -> vector<2x8x1xf32>
    %42 = vector.broadcast %41 : vector<2x8x1xf32> to vector<2x8x8xf32>
    %43 = arith.mulf %38, %42 : vector<2x8x8xf32>
    %44 = arith.truncf %43 : vector<2x8x8xf32> to vector<2x8x8xbf16>
    "tpu.trace_start"() <{level = 10 : i32, message = "bqk,bkd->bqd"}> : () -> ()
    %cst_17 = arith.constant dense<0.000000e+00> : vector<2x8x8xf32>
    %45 = tpu.matmul %44, %30, %cst_17 {dimension_numbers = #tpu.dot_dimension_numbers<[2], [1], [1], [2], [0, 0, 0, 1, 1, 2], [0], [0]>} : vector<2x8x8xbf16>, vector<2x8x8xbf16>, vector<2x8x8xf32> -> vector<2x8x8xf32>
    "tpu.trace_stop"() : () -> ()
    %46 = vector.shape_cast %45 : vector<2x8x8xf32> to vector<16x8xf32>
    %47 = vector.extract_strided_slice %19 {offsets = [0, 8], sizes = [16, 8], strides = [1, 1]} : vector<16x32xf32> to vector<16x8xf32>
    %48 = vector.shape_cast %47 : vector<16x8xf32> to vector<2x8x8xf32>
    %49 = arith.truncf %48 : vector<2x8x8xf32> to vector<2x8x8xbf16>
    %50 = vector.extract_strided_slice %20 {offsets = [0, 8], sizes = [16, 8], strides = [1, 1]} : vector<16x32xf32> to vector<16x8xf32>
    %51 = vector.shape_cast %50 : vector<16x8xf32> to vector<2x8x8xf32>
    %52 = arith.truncf %51 : vector<2x8x8xf32> to vector<2x8x8xbf16>
    %53 = vector.extract_strided_slice %21 {offsets = [0, 8], sizes = [16, 8], strides = [1, 1]} : vector<16x32xf32> to vector<16x8xf32>
    %54 = vector.shape_cast %53 : vector<16x8xf32> to vector<2x8x8xf32>
    %55 = arith.truncf %54 : vector<2x8x8xf32> to vector<2x8x8xbf16>
    "tpu.trace_start"() <{level = 10 : i32, message = "bqd,bkd->bqk"}> : () -> ()
    %cst_18 = arith.constant dense<0.000000e+00> : vector<2x8x8xf32>
    %56 = tpu.matmul %49, %52, %cst_18 {dimension_numbers = #tpu.dot_dimension_numbers<[2], [2], [1], [1], [0, 0, 0, 1, 1, 1], [0], [0]>} : vector<2x8x8xbf16>, vector<2x8x8xbf16>, vector<2x8x8xf32> -> vector<2x8x8xf32>
    %cst_19 = arith.constant -1.000000e+10 : f32
    "tpu.trace_stop"() : () -> ()
    %57 = vector.broadcast %cst_19 : f32 to vector<2x8x8xf32>
    %58 = arith.select %8, %57, %56 : vector<2x8x8xi1>, vector<2x8x8xf32>
    %cst_20 = arith.constant dense<0xFF800000> : vector<2x8xf32>
    %59 = vector.multi_reduction <maximumf>, %58, %cst_20 [2] : vector<2x8x8xf32> to vector<2x8xf32>
    %60 = vector.shape_cast %59 : vector<2x8xf32> to vector<2x8x1xf32>
    %61 = vector.broadcast %60 : vector<2x8x1xf32> to vector<2x8x8xf32>
    %62 = arith.subf %58, %61 : vector<2x8x8xf32>
    %63 = math.exp %62 : vector<2x8x8xf32>
    %cst_21 = arith.constant dense<0.000000e+00> : vector<2x8xf32>
    %64 = vector.multi_reduction <add>, %63, %cst_21 [2] : vector<2x8x8xf32> to vector<2x8xf32>
    %65 = vector.shape_cast %64 : vector<2x8xf32> to vector<2x8x1xf32>
    %66 = tpu.reciprocal %65 {approx = true} : vector<2x8x1xf32> -> vector<2x8x1xf32>
    %67 = vector.broadcast %66 : vector<2x8x1xf32> to vector<2x8x8xf32>
    %68 = arith.mulf %63, %67 : vector<2x8x8xf32>
    %69 = arith.truncf %68 : vector<2x8x8xf32> to vector<2x8x8xbf16>
    "tpu.trace_start"() <{level = 10 : i32, message = "bqk,bkd->bqd"}> : () -> ()
    %cst_22 = arith.constant dense<0.000000e+00> : vector<2x8x8xf32>
    %70 = tpu.matmul %69, %55, %cst_22 {dimension_numbers = #tpu.dot_dimension_numbers<[2], [1], [1], [2], [0, 0, 0, 1, 1, 2], [0], [0]>} : vector<2x8x8xbf16>, vector<2x8x8xbf16>, vector<2x8x8xf32> -> vector<2x8x8xf32>
    "tpu.trace_stop"() : () -> ()
    %71 = vector.shape_cast %70 : vector<2x8x8xf32> to vector<16x8xf32>
    %72 = vector.extract_strided_slice %19 {offsets = [0, 16], sizes = [16, 8], strides = [1, 1]} : vector<16x32xf32> to vector<16x8xf32>
    %73 = vector.shape_cast %72 : vector<16x8xf32> to vector<2x8x8xf32>
    %74 = arith.truncf %73 : vector<2x8x8xf32> to vector<2x8x8xbf16>
    %75 = vector.extract_strided_slice %20 {offsets = [0, 16], sizes = [16, 8], strides = [1, 1]} : vector<16x32xf32> to vector<16x8xf32>
    %76 = vector.shape_cast %75 : vector<16x8xf32> to vector<2x8x8xf32>
    %77 = arith.truncf %76 : vector<2x8x8xf32> to vector<2x8x8xbf16>
    %78 = vector.extract_strided_slice %21 {offsets = [0, 16], sizes = [16, 8], strides = [1, 1]} : vector<16x32xf32> to vector<16x8xf32>
    %79 = vector.shape_cast %78 : vector<16x8xf32> to vector<2x8x8xf32>
    %80 = arith.truncf %79 : vector<2x8x8xf32> to vector<2x8x8xbf16>
    "tpu.trace_start"() <{level = 10 : i32, message = "bqd,bkd->bqk"}> : () -> ()
    %cst_23 = arith.constant dense<0.000000e+00> : vector<2x8x8xf32>
    %81 = tpu.matmul %74, %77, %cst_23 {dimension_numbers = #tpu.dot_dimension_numbers<[2], [2], [1], [1], [0, 0, 0, 1, 1, 1], [0], [0]>} : vector<2x8x8xbf16>, vector<2x8x8xbf16>, vector<2x8x8xf32> -> vector<2x8x8xf32>
    %cst_24 = arith.constant -1.000000e+10 : f32
    "tpu.trace_stop"() : () -> ()
    %82 = vector.broadcast %cst_24 : f32 to vector<2x8x8xf32>
    %83 = arith.select %8, %82, %81 : vector<2x8x8xi1>, vector<2x8x8xf32>
    %cst_25 = arith.constant dense<0xFF800000> : vector<2x8xf32>
    %84 = vector.multi_reduction <maximumf>, %83, %cst_25 [2] : vector<2x8x8xf32> to vector<2x8xf32>
    %85 = vector.shape_cast %84 : vector<2x8xf32> to vector<2x8x1xf32>
    %86 = vector.broadcast %85 : vector<2x8x1xf32> to vector<2x8x8xf32>
    %87 = arith.subf %83, %86 : vector<2x8x8xf32>
    %88 = math.exp %87 : vector<2x8x8xf32>
    %cst_26 = arith.constant dense<0.000000e+00> : vector<2x8xf32>
    %89 = vector.multi_reduction <add>, %88, %cst_26 [2] : vector<2x8x8xf32> to vector<2x8xf32>
    %90 = vector.shape_cast %89 : vector<2x8xf32> to vector<2x8x1xf32>
    %91 = tpu.reciprocal %90 {approx = true} : vector<2x8x1xf32> -> vector<2x8x1xf32>
    %92 = vector.broadcast %91 : vector<2x8x1xf32> to vector<2x8x8xf32>
    %93 = arith.mulf %88, %92 : vector<2x8x8xf32>
    %94 = arith.truncf %93 : vector<2x8x8xf32> to vector<2x8x8xbf16>
    "tpu.trace_start"() <{level = 10 : i32, message = "bqk,bkd->bqd"}> : () -> ()
    %cst_27 = arith.constant dense<0.000000e+00> : vector<2x8x8xf32>
    %95 = tpu.matmul %94, %80, %cst_27 {dimension_numbers = #tpu.dot_dimension_numbers<[2], [1], [1], [2], [0, 0, 0, 1, 1, 2], [0], [0]>} : vector<2x8x8xbf16>, vector<2x8x8xbf16>, vector<2x8x8xf32> -> vector<2x8x8xf32>
    "tpu.trace_stop"() : () -> ()
    %96 = vector.shape_cast %95 : vector<2x8x8xf32> to vector<16x8xf32>
    %97 = vector.extract_strided_slice %19 {offsets = [0, 24], sizes = [16, 8], strides = [1, 1]} : vector<16x32xf32> to vector<16x8xf32>
    %98 = vector.shape_cast %97 : vector<16x8xf32> to vector<2x8x8xf32>
    %99 = arith.truncf %98 : vector<2x8x8xf32> to vector<2x8x8xbf16>
    %100 = vector.extract_strided_slice %20 {offsets = [0, 24], sizes = [16, 8], strides = [1, 1]} : vector<16x32xf32> to vector<16x8xf32>
    %101 = vector.shape_cast %100 : vector<16x8xf32> to vector<2x8x8xf32>
    %102 = arith.truncf %101 : vector<2x8x8xf32> to vector<2x8x8xbf16>
    %103 = vector.extract_strided_slice %21 {offsets = [0, 24], sizes = [16, 8], strides = [1, 1]} : vector<16x32xf32> to vector<16x8xf32>
    %104 = vector.shape_cast %103 : vector<16x8xf32> to vector<2x8x8xf32>
    %105 = arith.truncf %104 : vector<2x8x8xf32> to vector<2x8x8xbf16>
    "tpu.trace_start"() <{level = 10 : i32, message = "bqd,bkd->bqk"}> : () -> ()
    %cst_28 = arith.constant dense<0.000000e+00> : vector<2x8x8xf32>
    %106 = tpu.matmul %99, %102, %cst_28 {dimension_numbers = #tpu.dot_dimension_numbers<[2], [2], [1], [1], [0, 0, 0, 1, 1, 1], [0], [0]>} : vector<2x8x8xbf16>, vector<2x8x8xbf16>, vector<2x8x8xf32> -> vector<2x8x8xf32>
    %cst_29 = arith.constant -1.000000e+10 : f32
    "tpu.trace_stop"() : () -> ()
    %107 = vector.broadcast %cst_29 : f32 to vector<2x8x8xf32>
    %108 = arith.select %8, %107, %106 : vector<2x8x8xi1>, vector<2x8x8xf32>
    %cst_30 = arith.constant dense<0xFF800000> : vector<2x8xf32>
    %109 = vector.multi_reduction <maximumf>, %108, %cst_30 [2] : vector<2x8x8xf32> to vector<2x8xf32>
    %110 = vector.shape_cast %109 : vector<2x8xf32> to vector<2x8x1xf32>
    %111 = vector.broadcast %110 : vector<2x8x1xf32> to vector<2x8x8xf32>
    %112 = arith.subf %108, %111 : vector<2x8x8xf32>
    %113 = math.exp %112 : vector<2x8x8xf32>
    %cst_31 = arith.constant dense<0.000000e+00> : vector<2x8xf32>
    %114 = vector.multi_reduction <add>, %113, %cst_31 [2] : vector<2x8x8xf32> to vector<2x8xf32>
    %115 = vector.shape_cast %114 : vector<2x8xf32> to vector<2x8x1xf32>
    %116 = tpu.reciprocal %115 {approx = true} : vector<2x8x1xf32> -> vector<2x8x1xf32>
    %117 = vector.broadcast %116 : vector<2x8x1xf32> to vector<2x8x8xf32>
    %118 = arith.mulf %113, %117 : vector<2x8x8xf32>
    %119 = arith.truncf %118 : vector<2x8x8xf32> to vector<2x8x8xbf16>
    "tpu.trace_start"() <{level = 10 : i32, message = "bqk,bkd->bqd"}> : () -> ()
    %cst_32 = arith.constant dense<0.000000e+00> : vector<2x8x8xf32>
    %120 = tpu.matmul %119, %105, %cst_32 {dimension_numbers = #tpu.dot_dimension_numbers<[2], [1], [1], [2], [0, 0, 0, 1, 1, 2], [0], [0]>} : vector<2x8x8xbf16>, vector<2x8x8xbf16>, vector<2x8x8xf32> -> vector<2x8x8xf32>
    "tpu.trace_stop"() : () -> ()
    %121 = vector.shape_cast %120 : vector<2x8x8xf32> to vector<16x8xf32>
    %122 = tpu.concatenate %46, %71, %96, %121 in 1 : vector<16x8xf32>, vector<16x8xf32>, vector<16x8xf32>, vector<16x8xf32> -> vector<16x32xf32>
    %123 = arith.truncf %122 : vector<16x32xf32> to vector<16x32xbf16>
    %c0_33 = arith.constant 0 : index
    %c0_34 = arith.constant 0 : index
    %c0_35 = arith.constant 0 : index
    %124 = vector.load %arg5[%c0_33, %c0_34, %c0_35] : memref<1x32x32xbf16, #tpu.memory_space<vmem>>, vector<1x32x32xbf16>
    %125 = vector.shape_cast %124 : vector<1x32x32xbf16> to vector<32x32xbf16>
    %cst_36 = arith.constant dense<0.000000e+00> : vector<16x32xf32>
    %126 = tpu.matmul %123, %125, %cst_36 {dimension_numbers = #tpu.dot_dimension_numbers<[1], [0], [0], [1], [0, 0, 1, 1], [], []>} : vector<16x32xbf16>, vector<32x32xbf16>, vector<16x32xf32> -> vector<16x32xf32>
    %c0_37 = arith.constant 0 : index
    %c0_38 = arith.constant 0 : index
    %c0_39 = arith.constant 0 : index
    %127 = vector.load %arg6[%c0_37, %c0_38, %c0_39] : memref<1x1x32xf32, #tpu.memory_space<vmem>>, vector<1x1x32xf32>
    %128 = vector.shape_cast %127 : vector<1x1x32xf32> to vector<1x32xf32>
    %129 = vector.broadcast %128 : vector<1x32xf32> to vector<16x32xf32>
    %130 = arith.addf %126, %129 : vector<16x32xf32>
    %131 = arith.addf %3, %130 : vector<16x32xf32>
    %c0_40 = arith.constant 0 : index
    %c0_41 = arith.constant 0 : index
    %c0_42 = arith.constant 0 : index
    %132 = vector.load %arg7[%c0_40, %c0_41, %c0_42] : memref<1x1x32xf32, #tpu.memory_space<vmem>>, vector<1x1x32xf32>
    %133 = vector.shape_cast %132 : vector<1x1x32xf32> to vector<1x32xf32>
    %c0_43 = arith.constant 0 : index
    %c0_44 = arith.constant 0 : index
    %c0_45 = arith.constant 0 : index
    %134 = vector.load %arg8[%c0_43, %c0_44, %c0_45] : memref<1x1x32xf32, #tpu.memory_space<vmem>>, vector<1x1x32xf32>
    %135 = vector.shape_cast %134 : vector<1x1x32xf32> to vector<1x32xf32>
    %cst_46 = arith.constant dense<0.000000e+00> : vector<16xf32>
    %136 = vector.multi_reduction <add>, %131, %cst_46 [1] : vector<16x32xf32> to vector<16xf32>
    %137 = vector.shape_cast %136 : vector<16xf32> to vector<16x1xf32>
    %cst_47 = arith.constant 3.200000e+01 : f32
    %138 = vector.broadcast %cst_47 : f32 to vector<16x1xf32>
    %139 = arith.divf %137, %138 : vector<16x1xf32>
    %140 = vector.broadcast %139 : vector<16x1xf32> to vector<16x32xf32>
    %141 = arith.subf %131, %140 : vector<16x32xf32>
    %142 = arith.mulf %141, %141 : vector<16x32xf32>
    %cst_48 = arith.constant dense<0.000000e+00> : vector<16xf32>
    %143 = vector.multi_reduction <add>, %142, %cst_48 [1] : vector<16x32xf32> to vector<16xf32>
    %144 = vector.shape_cast %143 : vector<16xf32> to vector<16x1xf32>
    %cst_49 = arith.constant 3.200000e+01 : f32
    %145 = vector.broadcast %cst_49 : f32 to vector<16x1xf32>
    %146 = arith.divf %144, %145 : vector<16x1xf32>
    %147 = vector.broadcast %139 : vector<16x1xf32> to vector<16x32xf32>
    %148 = arith.subf %131, %147 : vector<16x32xf32>
    %cst_50 = arith.constant 9.99999974E-6 : f32
    %149 = vector.broadcast %cst_50 : f32 to vector<16x1xf32>
    %150 = arith.addf %146, %149 : vector<16x1xf32>
    %151 = math.rsqrt %150 : vector<16x1xf32>
    %152 = vector.broadcast %151 : vector<16x1xf32> to vector<16x32xf32>
    %153 = arith.mulf %148, %152 : vector<16x32xf32>
    %154 = vector.broadcast %133 : vector<1x32xf32> to vector<16x32xf32>
    %155 = arith.mulf %153, %154 : vector<16x32xf32>
    %156 = vector.broadcast %135 : vector<1x32xf32> to vector<16x32xf32>
    %157 = arith.addf %155, %156 : vector<16x32xf32>
    %158 = arith.truncf %157 : vector<16x32xf32> to vector<16x32xbf16>
    %c0_51 = arith.constant 0 : index
    %c0_52 = arith.constant 0 : index
    %c0_53 = arith.constant 0 : index
    %159 = vector.load %arg9[%c0_51, %c0_52, %c0_53] : memref<1x32x64xbf16, #tpu.memory_space<vmem>>, vector<1x32x64xbf16>
    %160 = vector.shape_cast %159 : vector<1x32x64xbf16> to vector<32x64xbf16>
    %cst_54 = arith.constant dense<0.000000e+00> : vector<16x64xf32>
    %161 = tpu.matmul %158, %160, %cst_54 {dimension_numbers = #tpu.dot_dimension_numbers<[1], [0], [0], [1], [0, 0, 1, 1], [], []>} : vector<16x32xbf16>, vector<32x64xbf16>, vector<16x64xf32> -> vector<16x64xf32>
    %c0_55 = arith.constant 0 : index
    %c0_56 = arith.constant 0 : index
    %c0_57 = arith.constant 0 : index
    %162 = vector.load %arg10[%c0_55, %c0_56, %c0_57] : memref<1x1x64xf32, #tpu.memory_space<vmem>>, vector<1x1x64xf32>
    %163 = vector.shape_cast %162 : vector<1x1x64xf32> to vector<1x64xf32>
    %164 = vector.broadcast %163 : vector<1x64xf32> to vector<16x64xf32>
    %165 = arith.addf %161, %164 : vector<16x64xf32>
    %cst_58 = arith.constant 0.000000e+00 : f32
    %166 = vector.broadcast %cst_58 : f32 to vector<16x64xf32>
    %167 = arith.maximumf %165, %166 : vector<16x64xf32>
    %168 = arith.truncf %167 : vector<16x64xf32> to vector<16x64xbf16>
    %c0_59 = arith.constant 0 : index
    %c0_60 = arith.constant 0 : index
    %c0_61 = arith.constant 0 : index
    %169 = vector.load %arg11[%c0_59, %c0_60, %c0_61] : memref<1x64x32xbf16, #tpu.memory_space<vmem>>, vector<1x64x32xbf16>
    %170 = vector.shape_cast %169 : vector<1x64x32xbf16> to vector<64x32xbf16>
    %cst_62 = arith.constant dense<0.000000e+00> : vector<16x32xf32>
    %171 = tpu.matmul %168, %170, %cst_62 {dimension_numbers = #tpu.dot_dimension_numbers<[1], [0], [0], [1], [0, 0, 1, 1], [], []>} : vector<16x64xbf16>, vector<64x32xbf16>, vector<16x32xf32> -> vector<16x32xf32>
    %c0_63 = arith.constant 0 : index
    %c0_64 = arith.constant 0 : index
    %c0_65 = arith.constant 0 : index
    %172 = vector.load %arg12[%c0_63, %c0_64, %c0_65] : memref<1x1x32xf32, #tpu.memory_space<vmem>>, vector<1x1x32xf32>
    %173 = vector.shape_cast %172 : vector<1x1x32xf32> to vector<1x32xf32>
    %174 = vector.broadcast %173 : vector<1x32xf32> to vector<16x32xf32>
    %175 = arith.addf %171, %174 : vector<16x32xf32>
    %176 = arith.addf %157, %175 : vector<16x32xf32>
    %c0_66 = arith.constant 0 : index
    %c0_67 = arith.constant 0 : index
    %c0_68 = arith.constant 0 : index
    %177 = vector.load %arg13[%c0_66, %c0_67, %c0_68] : memref<1x1x32xf32, #tpu.memory_space<vmem>>, vector<1x1x32xf32>
    %178 = vector.shape_cast %177 : vector<1x1x32xf32> to vector<1x32xf32>
    %c0_69 = arith.constant 0 : index
    %c0_70 = arith.constant 0 : index
    %c0_71 = arith.constant 0 : index
    %179 = vector.load %arg14[%c0_69, %c0_70, %c0_71] : memref<1x1x32xf32, #tpu.memory_space<vmem>>, vector<1x1x32xf32>
    %180 = vector.shape_cast %179 : vector<1x1x32xf32> to vector<1x32xf32>
    %cst_72 = arith.constant dense<0.000000e+00> : vector<16xf32>
    %181 = vector.multi_reduction <add>, %176, %cst_72 [1] : vector<16x32xf32> to vector<16xf32>
    %182 = vector.shape_cast %181 : vector<16xf32> to vector<16x1xf32>
    %cst_73 = arith.constant 3.200000e+01 : f32
    %183 = vector.broadcast %cst_73 : f32 to vector<16x1xf32>
    %184 = arith.divf %182, %183 : vector<16x1xf32>
    %185 = vector.broadcast %184 : vector<16x1xf32> to vector<16x32xf32>
    %186 = arith.subf %176, %185 : vector<16x32xf32>
    %187 = arith.mulf %186, %186 : vector<16x32xf32>
    %cst_74 = arith.constant dense<0.000000e+00> : vector<16xf32>
    %188 = vector.multi_reduction <add>, %187, %cst_74 [1] : vector<16x32xf32> to vector<16xf32>
    %189 = vector.shape_cast %188 : vector<16xf32> to vector<16x1xf32>
    %cst_75 = arith.constant 3.200000e+01 : f32
    %190 = vector.broadcast %cst_75 : f32 to vector<16x1xf32>
    %191 = arith.divf %189, %190 : vector<16x1xf32>
    %192 = vector.broadcast %184 : vector<16x1xf32> to vector<16x32xf32>
    %193 = arith.subf %176, %192 : vector<16x32xf32>
    %cst_76 = arith.constant 9.99999974E-6 : f32
    %194 = vector.broadcast %cst_76 : f32 to vector<16x1xf32>
    %195 = arith.addf %191, %194 : vector<16x1xf32>
    %196 = math.rsqrt %195 : vector<16x1xf32>
    %197 = vector.broadcast %196 : vector<16x1xf32> to vector<16x32xf32>
    %198 = arith.mulf %193, %197 : vector<16x32xf32>
    %199 = vector.broadcast %178 : vector<1x32xf32> to vector<16x32xf32>
    %200 = arith.mulf %198, %199 : vector<16x32xf32>
    %201 = vector.broadcast %180 : vector<1x32xf32> to vector<16x32xf32>
    %202 = arith.addf %200, %201 : vector<16x32xf32>
    %c0_77 = arith.constant 0 : index
    %c0_78 = arith.constant 0 : index
    %203 = vector.load %arg15[%c0_77, %c0_78] : memref<16x32xf32, #tpu.memory_space<vmem>>, vector<16x32xf32>
    tpu.vector_store %arg15[%c0_77, %c0_78], %202 {strides = array<i32>} : memref<16x32xf32, #tpu.memory_space<vmem>>, vector<16x32xf32>,
    return
  }
  func.func @transform_0(%arg0: i32) -> (i32, i32) {
    %c0_i32 = arith.constant 0 : i32
    %c0_i32_0 = arith.constant 0 : i32
    %c0_i32_1 = arith.constant 0 : i32
    return %c0_i32, %c0_i32_0 : i32, i32
  }
  func.func @transform_1(%arg0: i32) -> (i32, i32, i32) {
    %c0_i32 = arith.constant 0 : i32
    %c0_i32_0 = arith.constant 0 : i32
    %c0_i32_1 = arith.constant 0 : i32
    %c0_i32_2 = arith.constant 0 : i32
    return %c0_i32, %c0_i32_0, %c0_i32_1 : i32, i32, i32
  }
  func.func @transform_2(%arg0: i32) -> (i32, i32, i32) {
    %c0_i32 = arith.constant 0 : i32
    %c0_i32_0 = arith.constant 0 : i32
    %c0_i32_1 = arith.constant 0 : i32
    return %arg0, %c0_i32, %c0_i32_0 : i32, i32, i32
  }
  func.func @transform_3(%arg0: i32) -> (i32, i32, i32) {
    %c0_i32 = arith.constant 0 : i32
    %c0_i32_0 = arith.constant 0 : i32
    %c0_i32_1 = arith.constant 0 : i32
    return %arg0, %c0_i32, %c0_i32_0 : i32, i32, i32
  }
  func.func @transform_4(%arg0: i32) -> (i32, i32, i32) {
    %c0_i32 = arith.constant 0 : i32
    %c0_i32_0 = arith.constant 0 : i32
    %c0_i32_1 = arith.constant 0 : i32
    return %arg0, %c0_i32, %c0_i32_0 : i32, i32, i32
  }
  func.func @transform_5(%arg0: i32) -> (i32, i32, i32) {
    %c0_i32 = arith.constant 0 : i32
    %c0_i32_0 = arith.constant 0 : i32
    %c0_i32_1 = arith.constant 0 : i32
    return %arg0, %c0_i32, %c0_i32_0 : i32, i32, i32
  }
  func.func @transform_6(%arg0: i32) -> (i32, i32, i32) {
    %c0_i32 = arith.constant 0 : i32
    %c0_i32_0 = arith.constant 0 : i32
    %c0_i32_1 = arith.constant 0 : i32
    return %arg0, %c0_i32, %c0_i32_0 : i32, i32, i32
  }
  func.func @transform_7(%arg0: i32) -> (i32, i32, i32) {
    %c0_i32 = arith.constant 0 : i32
    %c0_i32_0 = arith.constant 0 : i32
    %c0_i32_1 = arith.constant 0 : i32
    return %arg0, %c0_i32, %c0_i32_0 : i32, i32, i32
  }
  func.func @transform_8(%arg0: i32) -> (i32, i32, i32) {
    %c0_i32 = arith.constant 0 : i32
    %c0_i32_0 = arith.constant 0 : i32
    %c0_i32_1 = arith.constant 0 : i32
    return %arg0, %c0_i32, %c0_i32_0 : i32, i32, i32
  }
  func.func @transform_9(%arg0: i32) -> (i32, i32, i32) {
    %c0_i32 = arith.constant 0 : i32
    %c0_i32_0 = arith.constant 0 : i32
    %c0_i32_1 = arith.constant 0 : i32
    return %arg0, %c0_i32, %c0_i32_0 : i32, i32, i32
  }
  func.func @transform_10(%arg0: i32) -> (i32, i32, i32) {
    %c0_i32 = arith.constant 0 : i32
    %c0_i32_0 = arith.constant 0 : i32
    %c0_i32_1 = arith.constant 0 : i32
    return %arg0, %c0_i32, %c0_i32_0 : i32, i32, i32
  }
  func.func @transform_11(%arg0: i32) -> (i32, i32, i32) {
    %c0_i32 = arith.constant 0 : i32
    %c0_i32_0 = arith.constant 0 : i32
    %c0_i32_1 = arith.constant 0 : i32
    return %arg0, %c0_i32, %c0_i32_0 : i32, i32, i32
  }
  func.func @transform_12(%arg0: i32) -> (i32, i32, i32) {
    %c0_i32 = arith.constant 0 : i32
    %c0_i32_0 = arith.constant 0 : i32
    %c0_i32_1 = arith.constant 0 : i32
    return %arg0, %c0_i32, %c0_i32_0 : i32, i32, i32
  }
  func.func @transform_13(%arg0: i32) -> (i32, i32, i32) {
    %c0_i32 = arith.constant 0 : i32
    %c0_i32_0 = arith.constant 0 : i32
    %c0_i32_1 = arith.constant 0 : i32
    return %arg0, %c0_i32, %c0_i32_0 : i32, i32, i32
  }
  func.func @transform_14(%arg0: i32) -> (i32, i32) {
    %c0_i32 = arith.constant 0 : i32
    %c0_i32_0 = arith.constant 0 : i32
    %c0_i32_1 = arith.constant 0 : i32
    return %c0_i32, %c0_i32_0 : i32, i32
  }
}

</mosaic_0001>

<bundles_post_ra>
// kernel: tpu_custom_call.1
= control target key start
LH: loop header
LB: loop body
LE: loop exit
PB: predicated region body
PF: predicated region fallthrough
CT: control target
= control target key end

     0   :  { %s3557_s0 = inlined_call_operand.hbm [shape: f32[16,32], index: 0, kind: input, shape index: {}]   ;;  %s3558_s1 = inlined_call_operand.vmem [shape: f32[2,1,8], index: 1, kind: input, shape index: {}]   ;;  %s3559_s2 = inlined_call_operand.vmem [shape: bf16[2,32,96], index: 2, kind: input, shape index: {}]   ;;  %s3560_s3 = inlined_call_operand.vmem [shape: f32[2,1,96], index: 3, kind: input, shape index: {}]   ;;  %s3561_s4 = inlined_call_operand.vmem [shape: bf16[2,32,32], index: 4, kind: input, shape index: {}]   ;;  %s3562_s5 = inlined_call_operand.hbm [shape: f32[2,1,32], index: 5, kind: input, shape index: {}]   ;;  %s3563_s6 = inlined_call_operand.hbm [shape: f32[2,1,32], index: 6, kind: input, shape index: {}]   ;;  %s3564_s7 = inlined_call_operand.hbm [shape: f32[2,1,32], index: 7, kind: input, shape index: {}]   ;;  %s3565_s8 = inlined_call_operand.vmem [shape: bf16[2,32,64], index: 8, kind: input, shape index: {}]   ;;  %s3566_s9 = inlined_call_operand.hbm [shape: f32[2,1,64], index: 9, kind: input, shape index: {}]   ;;  %s3567_s10 = inlined_call_operand.vmem [shape: bf16[2,64,32], index: 10, kind: input, shape index: {}]   ;;  %s3568_s11 = inlined_call_operand.vmem [shape: f32[2,1,32], index: 11, kind: input, shape index: {}]   ;;  %s3569_s12 = inlined_call_operand.vmem [shape: f32[2,1,32], index: 12, kind: input, shape index: {}]   ;;  %s3570_s13 = inlined_call_operand.vmem [shape: f32[2,1,32], index: 13, kind: input, shape index: {}]   ;;  %s3571_s14 = inlined_call_operand.hbm [shape: f32[16,32], index: 14, kind: output, shape index: {}]  }
   0x1   :  { %3584 = sst [smem:[#allocation19_spill]] %s3557_s0 }
   0x2   :  { %3585 = sst [smem:[#allocation20_spill]] %s3558_s1 }
   0x3   :  { %3586 = sst [smem:[#allocation21_spill]] %s3559_s2 }
   0x4   :  { %3587 = sst [smem:[#allocation22_spill]] %s3562_s5 }
   0x5   :  { %3588 = sst [smem:[#allocation23_spill]] %s3564_s7 }
   0x6   :  { %3589 = sst [smem:[#allocation24_spill]] %s3567_s10 }
   0x7   :  { %3590 = sst [smem:[#allocation25_spill]] %s3568_s11 }
   0x8   :  { %3591 = sst [smem:[#allocation26_spill]] %s3569_s12 }
   0x9   :  { %3592 = sst [smem:[#allocation27_spill]] %s3570_s13 }
   0xa   :  { %3593 = sst [smem:[#allocation28_spill]] %s3571_s14 }
   0xb   :  { %19 = vsyncpa [#allocation3], 0 }
   0xc   :  { %20 = vsyncpa [#allocation6], 0 }
   0xd   :  { %22 = vsyncpa [#allocation6 + $0x1], 0 }
   0xe   :  { %23 = vsyncpa [#allocation9], 0 }
   0xf   :  { %25 = vsyncpa [#allocation9 + $0x1], 0 }
  0x10   :  { %26 = vsyncpa [#allocation4], 0  ;;  %s2987_s29 = smov 0   ;;  %s2989_s30 = smov 0  }
  0x11   :  { %s2991_s15 = smov 0   ;;  %s2993_s16 = smov 0  }
  0x12 LB: > { %3594 = sst [smem:[#allocation16_spill]] %s2880_s15  ;;  %s3008_s17 = sadd.s32 1, %s2884_s16   ;;  %s2884_s16 = sphi %s2993_s16, %s3631_s16   ;;  %s2880_s15 = sphi %s2991_s15, %s3633_s15   ;;  %s2876_s30 = sphi %s2989_s30, %s3635_s30   ;;  %s2872_s29 = sphi %s2987_s29, %s3634_s29  }
  0x13   : > { %3595 = sst [smem:[#allocation17_spill]] %s3008_s17  ;;  %s159_s18 = sadd.s32 1, %s2880_s15 }
  0x14   : > { %s156_s19 = ssub.s32 %s2884_s16, %s3008_s17  ;;  %p166_p0 = scmp.ne.s32.totalorder %s2880_s15, %s2876_s30 }
  0x15   : > { %p157_p1 = scmp.eq.s32.totalorder %s156_s19, 0  ;;  %p167_p2 = scmp.eq.s32.totalorder %s2884_s16, 0 }
  0x16   : > { %p2541_p3 = scmp.lt.s32.totalorder %s2884_s16, 2  ;;  %s3022_s22 = sand.u32 1, %s2880_s15  }
  0x17   : > { %s3018_s20 = scalar_select %p157_p1, %s2880_s15, %s159_s18  }
  0x18   : > { %p168_p4 = por %p167_p2, %p166_p0  ;;  %s3025_s23 = sshll.u32 %s2884_s16, 4 }
  0x19   : > { %3596 = sst [smem:[#allocation18_spill]] %s3018_s20  ;;  %s3597_s5 = sld [smem:[#allocation22_spill]] }
  0x1a   : > { %s466_s27 = scalar_lea.vmem [#allocation5], %s3022_s22  ;;  %p3036_p5 = pnand %p2541_p3, %p168_p4 }
  0x1b   : > { %s473_s28 = sshll.u32 %s466_s27, 4  ;;  %s3599_s7 = sld [smem:[#allocation23_spill]]  ;;  %s3034_s28 = int_to_ptr.vmem [resolvable:$true] %s473_s28 }
  0x1c   : > { %s3598_s18 = scalar_select %p3036_p5, 1, 0 }
  0x1d   : > { %s3600_s25 = sand.u32 1, %s2884_s16   ;;  %p3054_p7 = pneg %p3036_p5 }
  0x1e   : > { %s3048_s20 = scalar_lea.sflag [#allocation6], %s3600_s25 }
  0x1f   : > { %s3031_s26 = scalar_lea.hbm %s3597_s5, %s3025_s23  ;;  %s2669_s21 = scalar_lea.hbm %s3597_s5, 32 }
  0x20   : > { %s2664_s15 = scalar_lea.hbm %s3031_s26, 16  ;;  %p2670_p10 = scmp.lt.u32.totalorder %s3031_s26, %s3597_s5 }
  0x21   : > { %s3044_s24 = scalar_lea.hbm %s3599_s7, %s3025_s23  ;;  %p2665_p6 = scmp.ne.s32.totalorder %s3031_s26, %s2664_s15 }
  0x22   : > { %s3601_s27 = scalar_select %p3054_p7, 1, 0 }
  0x23   : > { %p2667_p8 = pnand %p3054_p7, %p2665_p6  ;;  %p2671_p11 = scmp.lt.u32.totalorder %s2669_s21, %s2664_s15 }
  0x24   : > { %p2673_p13 = scmp.lt.u32.totalorder %s2664_s15, %s3031_s26 }
  0x25   : > { %p2668_p9 = pneg %p2667_p8  ;;  %p2672_p12 = por %p2671_p11, %p2670_p10 }
  0x27   : > { %p2674_p0 = por %p2673_p13, %p2672_p12 }
  0x29   : > { %p2675_p1 = pnand %p2674_p0, %p2668_p9 }
  0x2b   : > { %2678 = shalt.err (!%p2675_p1)
}
  0x2c   : > { %s2679_s25 = scalar_lea.vmem %s3034_s28, 16  ;;  %s2886_s14 = smov [#allocation5]  }
  0x2d   : > { %p2680_p2 = scmp.ne.s32.totalorder %s3034_s28, %s2679_s25  ;;  %s2684_s17 = sshll.u32 %s2886_s14, 4  ;;  %s2685_s17 = int_to_ptr.vmem [resolvable:$false] %s2684_s17 }
  0x2e   : > { %s2686_s1 = scalar_lea.vmem %s2685_s17, 32  ;;  %p2687_p6 = scmp.lt.s32.totalorder %s3034_s28, %s2685_s17 }
  0x2f   : > { %p2682_p3 = pnand %p2680_p2, %p3054_p7  ;;  %p2688_p8 = scmp.lt.s32.totalorder %s2686_s1, %s2679_s25 }
  0x31   : > { %p2683_p4 = pneg %p2682_p3  ;;  %p2689_p10 = por %p2688_p8, %p2687_p6 }
  0x33   : > { %p2690_p11 = pnand %p2689_p10, %p2683_p4 }
  0x35   : > { %2693 = shalt.err (!%p2690_p11)
}
  0x36   : > { %2530 = dma.hbm_to_vmem [thread:$0]  (!%p3036_p5), %s3031_s26, 16, %s3034_s28, %s3048_s20  }
  0x37   : > { %s500_s15 = scalar_lea.vmem [#allocation8], %s3022_s22  ;;  %s3602_s19 = sand.u32 1, %s2884_s16  }
  0x38   : > { %s507_s21 = sshll.u32 %s500_s15, 4  ;;  %s3081_s25 = scalar_lea.sflag [#allocation9], %s3602_s19  ;;  %s508_s21 = int_to_ptr.vmem [resolvable:$true] %s507_s21 }
  0x39   : > { %s2694_s14 = scalar_lea.hbm %s3044_s24, 16  ;;  %s2699_s5 = scalar_lea.hbm %s3599_s7, 32 }
  0x3a   : > { %p2695_p9 = scmp.ne.s32.totalorder %s3044_s24, %s2694_s14  ;;  %p2700_p0 = scmp.lt.u32.totalorder %s3044_s24, %s3599_s7 }
  0x3b   : > { %p2701_p1 = scmp.lt.u32.totalorder %s2699_s5, %s2694_s14  ;;  %p2703_p3 = scmp.lt.u32.totalorder %s2694_s14, %s3044_s24 }
  0x3c   : > { %p2697_p12 = pnand %p2695_p9, %p3054_p7 }
  0x3d   : > { %p2702_p2 = por %p2701_p1, %p2700_p0 }
  0x3e   : > { %p2698_p13 = pneg %p2697_p12 }
  0x3f   : > { %p2704_p4 = por %p2703_p3, %p2702_p2 }
  0x41   : > { %p2705_p6 = pnand %p2704_p4, %p2698_p13 }
  0x43   : > { %2708 = shalt.err (!%p2705_p6)
}
  0x44   : > { %s2709_s26 = scalar_lea.vmem %s508_s21, 16  ;;  %s2887_s28 = smov [#allocation8]  }
  0x45   : > { %p2710_p8 = scmp.ne.s32.totalorder %s508_s21, %s2709_s26  ;;  %s2714_s15 = sshll.u32 %s2887_s28, 4  ;;  %s2715_s15 = int_to_ptr.vmem [resolvable:$false] %s2714_s15 }
  0x46   : > { %s2716_s19 = scalar_lea.vmem %s2715_s15, 32  ;;  %p2717_p9 = scmp.lt.s32.totalorder %s508_s21, %s2715_s15 }
  0x47   : > { %p2712_p10 = pnand %p2710_p8, %p3054_p7  ;;  %p2718_p12 = scmp.lt.s32.totalorder %s2716_s19, %s2709_s26 }
  0x49   : > { %p2713_p11 = pneg %p2712_p10  ;;  %p2719_p5 = por %p2718_p12, %p2717_p9 }
  0x4b   : > { %p2720_p0 = pnand %p2719_p5, %p2713_p11 }
  0x4d   : > { %2723 = shalt.err (!%p2720_p0)
}
  0x4e   : > { %p3603_p1 = scmp.ne.s32.totalorder %s3598_s18, 0  ;;  %s3102_s5 = sadd.s32 4294967295, %s2884_s16  }
  0x4f   : > { %p172_p5 = scmp.ne.s32.totalorder %s2876_s30, %s2872_s29  ;;  %p3579_p13 = scmp.eq.s32.totalorder %s3102_s5, 0 }
  0x50   : > { %2536 = dma.hbm_to_vmem [thread:$0]  (!%p3603_p1), %s3044_s24, 16, %s508_s21, %s3081_s25  }
  0x51   : > { %p2265_p2 = scmp.ge.s32.totalorder %s2884_s16, 1  ;;  %p412_p3 = scmp.lt.s32.totalorder %s2884_s16, 3 }
  0x52   : > { %p3112_p6 = por %p3579_p13, %p172_p5  ;;  %s2888_s24 = smov [#allocation2]  }
  0x53   : > { %p3116_p8 = pnand %p2265_p2, %p412_p3  ;;  %s424_s21 = sshll.u32 %s2888_s24, 4  ;;  %s3120_s21 = int_to_ptr.vmem [resolvable:$true] %s424_s21 }
  0x54   : > { %s3604_s12 = scalar_select %p3112_p6, 1, 0 }
  0x55   : > { %s3605_s13 = scalar_select %p3116_p8, 1, 0 }
  0x56   : > { %p2523_p10 = pneg %p3116_p8  ;;  %s3128_s16 = scalar_lea.hbm %s3563_s6, %s3025_s23 }
  0x57   : > { %s483_s1 = scalar_lea.vmem [#allocation7], %s3022_s22  ;;  %s3143_s19 = scalar_lea.hbm %s3566_s9, %s3025_s23 }
  0x58   : > { %p3132_p11 = pnand %p2523_p10, %p3579_p13  ;;  %s490_s26 = sshll.u32 %s483_s1, 4  ;;  %s3137_s26 = int_to_ptr.vmem [resolvable:$true] %s490_s26 }
  0x59   : > { %s3607_s0 = sld [smem:[#allocation19_spill]] }
  0x5a   : > { %p2726_p12 = pneg %p3132_p11 }
  0x5f   : > { %s2724_s29 = scalar_lea.hbm %s3607_s0, 256 }
  0x60   : > { %p2725_p9 = scmp.ne.s32.totalorder %s3607_s0, %s2724_s29  ;;  %p2731_p2 = scmp.lt.u32.totalorder %s2724_s29, %s3607_s0 }
  0x62   : > { %p2727_p0 = pnand %p2726_p12, %p2725_p9 }
  0x64   : > { %p2728_p5 = pneg %p2727_p0 }
  0x66   : > { %p2733_p3 = pnand %p2731_p2, %p2728_p5 }
  0x68   : > { %2736 = shalt.err (!%p2733_p3)
}
  0x69   : > { %s2737_s23 = scalar_lea.vmem %s3120_s21, 256  ;;  %p2745_p6 = scmp.lt.s32.totalorder %s3120_s21, %s3120_s21 }
  0x6a   : > { %p2738_p10 = scmp.ne.s32.totalorder %s3120_s21, %s2737_s23  ;;  %p2746_p8 = scmp.lt.s32.totalorder %s2737_s23, %s2737_s23 }
  0x6c   : > { %p2740_p4 = pnand %p2738_p10, %p2726_p12  ;;  %p2747_p1 = por %p2746_p8, %p2745_p6 }
  0x6e   : > { %p2741_p13 = pneg %p2740_p4 }
  0x70   : > { %p2748_p7 = pnand %p2747_p1, %p2741_p13 }
  0x72   : > { %2751 = shalt.err (!%p2748_p7)
}
  0x73   : > { %s2889_s7 = smov 128   ;;  %s2890_s10 = smov 8  }
  0x74   : > { %2526 = dma.hbm_to_vmem [thread:$0]  (!%p3132_p11), %s3607_s0, 256, %s3120_s21, [#allocation3], %s2889_s7, %s2889_s7, %s2890_s10  }
  0x75   : > { %s2752_s15 = scalar_lea.hbm %s3128_s16, 16  ;;  %p3608_p9 = scmp.ne.s32.totalorder %s3601_s27, 0 }
  0x76   : > { %p2753_p4 = scmp.ne.s32.totalorder %s3128_s16, %s2752_s15  ;;  %s2757_s14 = scalar_lea.hbm %s3563_s6, 32 }
  0x77   : > { %p2758_p7 = scmp.lt.u32.totalorder %s3128_s16, %s3563_s6  ;;  %p2759_p13 = scmp.lt.u32.totalorder %s2757_s14, %s2752_s15 }
  0x78   : > { %p2755_p6 = pnand %p2753_p4, %p3608_p9  ;;  %p2761_p12 = scmp.lt.u32.totalorder %s2752_s15, %s3128_s16 }
  0x79   : > { %p2760_p8 = por %p2759_p13, %p2758_p7 }
  0x7a   : > { %p2756_p1 = pneg %p2755_p6 }
  0x7b   : > { %p2762_p0 = por %p2761_p12, %p2760_p8 }
  0x7d   : > { %p2763_p5 = pnand %p2762_p0, %p2756_p1 }
  0x7f   : > { %2766 = shalt.err (!%p2763_p5)
}
  0x80   : > { %s2767_s21 = scalar_lea.vmem %s3137_s26, 16  ;;  %s2891_s17 = smov [#allocation7]  }
  0x81   : > { %p2768_p11 = scmp.ne.s32.totalorder %s3137_s26, %s2767_s21  ;;  %s2772_s7 = sshll.u32 %s2891_s17, 4  ;;  %s2773_s7 = int_to_ptr.vmem [resolvable:$false] %s2772_s7 }
  0x82   : > { %s2774_s10 = scalar_lea.vmem %s2773_s7, 32  ;;  %p2775_p10 = scmp.lt.s32.totalorder %s3137_s26, %s2773_s7 }
  0x83   : > { %p2770_p2 = pnand %p2768_p11, %p3608_p9  ;;  %p2776_p4 = scmp.lt.s32.totalorder %s2774_s10, %s2767_s21 }
  0x85   : > { %p2771_p3 = pneg %p2770_p2  ;;  %p2777_p6 = por %p2776_p4, %p2775_p10 }
  0x87   : > { %p2778_p7 = pnand %p2777_p6, %p2771_p3 }
  0x89   : > { %2781 = shalt.err (!%p2778_p7)
}
  0x8a   : > { %p3609_p1 = scmp.ne.s32.totalorder %s3598_s18, 0  ;;  %s525_s11 = scalar_lea.vmem [#allocation10], %s3022_s22 }
  0x8b   : > { %s532_s28 = sshll.u32 %s525_s11, 4  ;;  %s2782_s15 = scalar_lea.hbm %s3143_s19, 16  ;;  %s533_s28 = int_to_ptr.vmem [resolvable:$true] %s532_s28 }
  0x8c   : > { %2533 = dma.hbm_to_vmem [thread:$0]  (!%p3609_p1), %s3128_s16, 16, %s3137_s26, %s3048_s20  }
  0x8d   : > { %p2783_p13 = scmp.ne.s32.totalorder %s3143_s19, %s2782_s15  ;;  %s2787_s14 = scalar_lea.hbm %s3566_s9, 32 }
  0x8e   : > { %p2788_p0 = scmp.lt.u32.totalorder %s3143_s19, %s3566_s9  ;;  %p2789_p5 = scmp.lt.u32.totalorder %s2787_s14, %s2782_s15 }
  0x8f   : > { %p2785_p8 = pnand %p2783_p13, %p3608_p9  ;;  %p2791_p2 = scmp.lt.u32.totalorder %s2782_s15, %s3143_s19 }
  0x90   : > { %p2790_p11 = por %p2789_p5, %p2788_p0 }
  0x91   : > { %p2786_p12 = pneg %p2785_p8 }
  0x92   : > { %p2792_p3 = por %p2791_p2, %p2790_p11 }
  0x94   : > { %p2793_p10 = pnand %p2792_p3, %p2786_p12 }
  0x96   : > { %2796 = shalt.err (!%p2793_p10)
}
  0x97   : > { %s2797_s20 = scalar_lea.vmem %s533_s28, 16  ;;  %s2892_s22 = smov [#allocation10]  }
  0x98   : > { %p2798_p4 = scmp.ne.s32.totalorder %s533_s28, %s2797_s20  ;;  %s2802_s16 = sshll.u32 %s2892_s22, 4  ;;  %s2803_s16 = int_to_ptr.vmem [resolvable:$false] %s2802_s16 }
  0x99   : > { %s2804_s26 = scalar_lea.vmem %s2803_s16, 32  ;;  %p2805_p13 = scmp.lt.s32.totalorder %s533_s28, %s2803_s16 }
  0x9a   : > { %p2800_p6 = pnand %p2798_p4, %p3608_p9  ;;  %p2806_p8 = scmp.lt.s32.totalorder %s2804_s26, %s2797_s20 }
  0x9c   : > { %p2801_p7 = pneg %p2800_p6  ;;  %p2807_p1 = por %p2806_p8, %p2805_p13 }
  0x9e   : > { %p2808_p0 = pnand %p2807_p1, %p2801_p7 }
  0xa0   : > { %2811 = shalt.err (!%p2808_p0)
}
  0xa1   : > { %p3610_p5 = scmp.ne.s32.totalorder %s3598_s18, 0  ;;  %p3611_p12 = scmp.ne.s32.totalorder %s3605_s13, 0 }
  0xa2   : > { %p3612_p9 = scmp.eq.s32.totalorder (!%p3611_p12), %s3102_s5, 0 }
  0xa3   : > { %2539 = dma.hbm_to_vmem [thread:$0]  (!%p3610_p5), %s3143_s19, 16, %s533_s28, %s3081_s25  }
  0xa4   : > { %567 = sbr.rel (%p3611_p12) target bundleno = 4325 (0x10e5), region = 76 }
  0xab   : > { %2855 = dma.done.wait (%p3612_p9), [#allocation3], 256   ;;  %p3613_p11 = pmov %p3612_p9 }
  0xac   : > { %s573_s27 = sand.u32 1, %s3102_s5   ;;  %s3215_s21 = sand.u32 1, %s2876_s30  }
  0xad   : > { %2857 = vsyncadd (%p3613_p11), [#allocation3], 4294967040  ;;  %s574_s18 = scalar_lea.sflag [#allocation6], %s573_s27  ;;  %p3614_p1 = scmp.ne.s32.totalorder %s3604_s12, 0 }
  0xaf   : > { %2859 = dma.done.wait (%p3614_p1), %s574_s18, 32  }
  0xb0   : > { %2861 = vsyncadd (%p3614_p1), %s574_s18, 4294967264  ;;  %s590_s13 = scalar_lea.sflag [#allocation9], %s573_s27 }
  0xb1   : > { %2863 = dma.done.wait (%p3614_p1), %s590_s13, 32  }
  0xb2   : > { %2865 = vsyncadd (%p3614_p1), %s590_s13, 4294967264  ;;  %p683_p2 = scmp.lt.s32.totalorder %s3102_s5, 1  ;;  %s3615_s2 = sld [smem:[#allocation21_spill]] }
  0xb3   : > { %s3616_s13 = sld [smem:[#allocation24_spill]]  ;;  %s3617_s24 = sld [smem:[#allocation25_spill]] }
  0xb4   : > { %s3230_s7 = scalar_select %p683_p2, %s3102_s5, 1 }
  0xb5   : > { %s3618_s14 = sld [smem:[#allocation26_spill]]  ;;  %p3620_p3 = scmp.ne.s32.totalorder %s3102_s5, 0 }
  0xb6   : > { %s2325_s10 = sshll.u32 %s3230_s7, 4  ;;  %s2328_s26 = sshll.u32 %s3230_s7, 5  ;;  %v720_v0 = vld [vmem:[#allocation2] sm:$0xff] (!%p3620_p3)  ;;  %vm722_vm0 = vcmask (!%p3620_p3), 261120   ;;  %v721_v1 = vld [vmem:[#allocation2 + $0x8] sm:$0xff] (!%p3620_p3) }
  0xb7   : > { %s3243_s23 = scalar_lea.vmem %s3561_s4, %s2325_s10  ;;  %s3248_s16 = scalar_lea.vmem %s3565_s8, %s2325_s10  ;;  %723 = vst.msk [vmem:[#allocation11] sm:$0xff] (!%p3620_p3), %vm722_vm0, %v720_v0  ;;  %724 = vst.msk [vmem:[#allocation11 + $0x8] sm:$0xff] (!%p3620_p3), %vm722_vm0, %v721_v1 }
  0xb8   : > { %s687_s29 = scalar_lea.vmem %s3615_s2, %s2325_s10  ;;  %s3619_s2 = sld [smem:[#allocation27_spill]] }
  0xb9   : > { %s3254_s11 = scalar_lea.vmem %s3616_s13, %s2328_s26  ;;  %s708_s12 = scalar_lea.vmem %s3617_s24, %s3230_s7 }
  0xba   : > { %s600_s10 = scalar_lea.vmem [#allocation10], %s3215_s21  ;;  %719 = sbr.rel (%p3620_p3) target bundleno = 193 (0xc1), region = 100 }
  0xbb   : > { %s711_s1 = scalar_lea.vmem %s3618_s14, %s3230_s7 }
  0xbe   : > { %s714_s20 = scalar_lea.vmem %s3619_s2, %s3230_s7 }
  0xc1 PF: > { %v2614_v2 = vld [vmem:[%s687_s29] sm:$0xff]   ;;  %v2893_v3 = vmov 0.0   ;;  %v2615_v4 = vld [vmem:[%s687_s29 + $0x8] sm:$0xff]   ;;  %vm2894_vm1 = vmmov 0   ;;  %v3275_v5 = vld [vmem:[#allocation11] sm:$0xff]  ;;  %vm767_vm2 = vcmask 261120   ;;  %s3621_s17 = scalar_lea.vmem %s3560_s3, %s3230_s7  ;;  %v733_v25 = vlaneseq }
  0xc2   : > { %2375 = vmatprep.subr.bf16.mxu0 %v2893_v3  ;;  %2383 = vmatprep.subr.bf16.mxu1 %v2893_v3  ;;  %v3277_v6 = vld [vmem:[#allocation11 + $0x8] sm:$0xff]  ;;  %s2895_s25 = smov 96   ;;  %vm821_vm3 = vcmask 64512   ;;  %s3622_s29 = sld [smem:[#allocation20_spill]]  ;;  %v2896_v30 = vmov 0   ;;  %vm948_vm8 = vcmask 1043456  }
  0xc3   : > { %2376 = vmatpush3.bf16.msra.mxu0 %v2614_v2  ;;  %2379 = vmatprep.mubr.msk.bf16.mxu0 %vm2894_vm1, %v2893_v3  ;;  %v743_v7 = vpack.c.bf16 %v3277_v6, %v3275_v5  ;;  %v2283_v8 = vld [vmem:[%s3621_s17] ss:$0 sm:$0xff]  ;;  %v734_v27 = vshrl.u32 %v733_v25, 7  ;;  %s2897_s18 = smov 64   ;;  %s2898_s13 = smov 88   ;;  %vm1734_vm9 = vcmask 130048  }
  0xc4   : > { %2377 = vmatprep.subr.bf16.mxu0 %v2893_v3  ;;  %2385 = vmatprep.mubr.msk.bf16.mxu1 %vm2894_vm1, %v2893_v3  ;;  %s2899_s28 = smov 120   ;;  %s2900_s24 = smov 56   ;;  %vm1737_vm10 = vcmask 195584   ;;  %vm1965_vm11 = vcmask 523264  }
  0xc5   : > { %v735_v29 = vsub.s32 0, %v734_v27  ;;  %s2901_s14 = smov 80   ;;  %s2902_s0 = smov 112  }
  0xc6   : > { %s2903_s2 = smov 48   ;;  %s2904_s17 = smov 72  }
  0xc7   : > { %2378 = vmatpush3.bf16.msra.mxu0 %v2615_v4  ;;  %s2906_s19 = smov 40   ;;  %s2907_s15 = smov 8  }
  0xc8   : > { %2389 = vmatprep.subr.bf16.mxu0 %v2893_v3  ;;  %s3623_s22 = smov %s3622_s29  ;;  %v727_v26 = vld [vmem:[%s3622_s29] sm:$0x1]  ;;  %s2908_s29 = smov 16  }
  0xc9   : > { %vm729_vm4 = vcmp.eq.f32.partialorder %v727_v26, 0.0  ;;  %v728_v28 = vld [vmem:[%s3623_s22 + $0x1] sm:$0x1]  ;;  %s2909_s26 = smov 24   ;;  %s3626_s27 = scalar_lea.vmem [#allocation8], %s3215_s21 }
  0xca   : > { %2380 = vmatmul.mubr.msk.bf16.vlgmr.msra.gmra.mrb[0].mxu0 %vm767_vm2, %v743_v7  ;;  %v731_v31 = vsel %vm729_vm4, 1, %v2896_v30  ;;  %vm730_vm5 = vcmp.eq.f32.partialorder %v728_v28, 0.0  ;;  %p2543_p10 = scmp.eq.s32.totalorder %s3102_s5, 1 }
  0xcb   : > { %2391 = vmatprep.mubr.msk.bf16.mxu0 %vm2894_vm1, %v2893_v3  ;;  %v3321_v32 = vrot.slane %v731_v31, %v735_v29  ;;  %v732_v33 = vsel %vm730_vm5, 1, %v2896_v30 }
  0xcc   : > { %v3324_v34 = vrot.slane %v732_v33, %v735_v29 }
  0xcd   : > { %vm741_vm6 = vcmp.eq.s32.totalorder %v3321_v32, 1 }
  0xce   : > { %vm742_vm7 = vcmp.eq.s32.totalorder %v3324_v34, 1 }
 0x19d   : > { %v805_v9 = vpop.f32.mrb[0].mxu0 }
 0x19e   : > { %v806_v10 = vadd.f32 %v2283_v8, %v805_v9  ;;  %v2381_v11 = vpop.f32.mrb[1].mxu0 }
 0x19f   : > { %v808_v12 = vpop.f32.mrb[2].mxu0 }
 0x1a0   : > { %v3293_v13 = vpack.c.bf16 %v806_v10, %v806_v10  ;;  %v809_v14 = vadd.f32 %v2283_v8, %v808_v12  ;;  %v2382_v15 = vpop.f32.mrb[3].mxu0  ;;  %v812_v19 = vmul.f32 0.35355338, %v806_v10 }
 0x1a2   : > { %819 = vrot.lane.b32.xlu0 %v3293_v13, %s2895_s25  ;;  %v3296_v16 = vpack.c.bf16 %v809_v14, %v809_v14  ;;  %v3302_v22 = vpack.c.bf16 %v812_v19, %v812_v19  ;;  %v813_v23 = vmul.f32 0.35355338, %v809_v14 }
 0x1a4   : > { %v3309_v24 = vpack.c.bf16 %v813_v23, %v813_v23 }
 0x1a6   : > { %869 = vrot.lane.b32.xlu0 %v3296_v16, %s2895_s25  ;;  %s2905_s25 = smov 104  }
 0x214   : > { %v820_v17 = vpop.permute.xlu0 %819 }
 0x215   : > { %v826_v18 = vsel %vm821_vm3, %v820_v17, 0 }
 0x216   : > { %2384 = vmatpush3.bf16.xpose.msra.mxu1 %v826_v18 }
 0x217   : > { %2395 = vmatprep.subr.bf16.mxu1 %v2893_v3 }
 0x218   : > { %v870_v20 = vpop.permute.xlu0 %869 }
 0x219   : > { %v875_v21 = vsel %vm821_vm3, %v870_v20, 0 }
 0x21a   : > { %2390 = vmatpush3.bf16.xpose.msra.mxu0 %v875_v21 }
 0x21b   : > { %2401 = vmatprep.subr.bf16.mxu0 %v2893_v3 }
 0x21d   : > { %2386 = vmatmul.mubr.msk.bf16.vlgmr.msra.gmra.mrb[0].mxu1 %vm821_vm3, %v3302_v22 }
 0x21e   : > { %2397 = vmatprep.mubr.msk.bf16.mxu1 %vm2894_vm1, %v2893_v3 }
 0x221   : > { %2392 = vmatmul.mubr.msk.bf16.vlgmr.msra.gmra.mrb[4].mxu0 %vm821_vm3, %v3309_v24 }
 0x222   : > { %2403 = vmatprep.mubr.msk.bf16.mxu0 %vm2894_vm1, %v2893_v3 }
 0x2f0   : > { %v862_v35 = vpop.f32.mrb[0].mxu1 }
 0x2f1   : > { %v917_v36 = vsel %vm741_vm6, -1e+10, %v862_v35  ;;  %v2387_v37 = vpop.f32.mrb[1].mxu1 }
 0x2f2   : > { %v865_v38 = vpop.f32.mrb[2].mxu1  ;;  %v919_v39 = vsel %vm821_vm3, %v917_v36, -inf }
 0x2f3   : > { %920 = vmax.xlane.f32.xlu1 %v919_v39  ;;  %v2388_v40 = vpop.f32.mrb[3].mxu1 }
 0x2f4   : > { %v911_v41 = vpop.f32.mrb[4].mxu0 }
 0x2f5   : > { %v918_v42 = vsel %vm742_vm7, -1e+10, %v911_v41  ;;  %v2393_v43 = vpop.f32.mrb[5].mxu0 }
 0x2f6   : > { %v914_v44 = vpop.f32.mrb[6].mxu0  ;;  %v922_v45 = vsel %vm821_vm3, %v918_v42, -inf }
 0x2f7   : > { %923 = vmax.xlane.f32.xlu1 %v922_v45  ;;  %v2394_v46 = vpop.f32.mrb[7].mxu0 }
 0x308   : > { %943 = vrot.lane.b32.xlu1 %v3293_v13, %s2897_s18 }
 0x30c   : > { %992 = vrot.lane.b32.xlu1 %v3296_v16, %s2897_s18 }
 0x310   : > { %1043 = vrot.lane.b32.xlu1 %v3293_v13, %s2898_s13 }
 0x380   : > { %v921_v47 = vpop.xlane.xlu1 %920 }
 0x381   : > { %v925_v48 = vsub.f32 %v917_v36, %v921_v47 }
 0x383   : > { %v927_v49 = vmul.f32 1.442695, %v925_v48 }
 0x384   : > { %v924_v50 = vpop.xlane.xlu1 %923 }
 0x385   : > { %2624 = vpow2.f32 %v927_v49  ;;  %v926_v51 = vsub.f32 %v918_v42, %v924_v50 }
 0x387   : > { %v929_v52 = vmul.f32 1.442695, %v926_v51 }
 0x388   : > { %v944_v53 = vpop.permute.xlu1 %943 }
 0x389   : > { %2626 = vpow2.f32 %v929_v52  ;;  %v950_v54 = vsel %vm948_vm8, %v944_v53, 0 }
 0x38a   : > { %2396 = vmatpush3.bf16.msra.mxu1 %v950_v54 }
 0x38b   : > { %2407 = vmatprep.subr.bf16.mxu1 %v2893_v3 }
 0x38c   : > { %v993_v55 = vpop.permute.xlu1 %992 }
 0x38d   : > { %v998_v56 = vsel %vm948_vm8, %v993_v55, 0 }
 0x38e   : > { %2402 = vmatpush3.bf16.msra.mxu0 %v998_v56 }
 0x38f   : > { %v2625_v57 = vpop.eup %2624  ;;  %2413 = vmatprep.subr.bf16.mxu0 %v2893_v3 }
 0x390   : > { %v931_v58 = vsel %vm821_vm3, %v2625_v57, 0.0  ;;  %v1044_v61 = vpop.permute.xlu1 %1043 }
 0x391   : > { %932 = vadd.xlane.f32.xlu0 %v931_v58  ;;  %v1049_v7 = vsel %vm821_vm3, %v1044_v61, 0 }
 0x393   : > { %v2627_v59 = vpop.eup %2626 }
 0x394   : > { %v934_v60 = vsel %vm821_vm3, %v2627_v59, 0.0 }
 0x395   : > { %935 = vadd.xlane.f32.xlu1 %v934_v60 }
 0x3a6   : > { %1094 = vrot.lane.b32.xlu1 %v3296_v16, %s2898_s13 }
 0x3a7   : > { %1041 = vrot.lane.b32.xlu0 %v3302_v22, %s2899_s28 }
 0x3aa   : > { %1092 = vrot.lane.b32.xlu1 %v3309_v24, %s2899_s28 }
 0x41e   : > { %v933_v62 = vpop.xlane.xlu0 %932 }
 0x41f   : > { %2628 = vrcp.f32 %v933_v62 }
 0x422   : > { %v936_v63 = vpop.xlane.xlu1 %935  ;;  %v1042_v12 = vpop.permute.xlu0 %1041 }
 0x423   : > { %2630 = vrcp.f32 %v936_v63 }
 0x426   : > { %v1095_v9 = vpop.permute.xlu1 %1094 }
 0x427   : > { %v1100_v11 = vsel %vm821_vm3, %v1095_v9, 0 }
 0x429   : > { %v2629_v0 = vpop.eup %2628 }
 0x42a   : > { %v939_v1 = vmul.f32 %v2629_v0, %v2625_v57  ;;  %v1093_v14 = vpop.permute.xlu1 %1092 }
 0x42c   : > { %v941_v2 = vpack.c.bf16 %v939_v1, %v939_v1 }
 0x42d   : > { %v2631_v4 = vpop.eup %2630 }
 0x42e   : > { %v940_v8 = vmul.f32 %v2631_v4, %v2627_v59  ;;  %2398 = vmatmul.mubr.msk.bf16.vlgmr.msra.gmra.mrb[4].mxu1 %vm821_vm3, %v941_v2 }
 0x42f   : > { %2408 = vmatpush3.bf16.xpose.msra.mxu1 %v1049_v7  ;;  %2409 = vmatprep.mubr.msk.bf16.mxu1 %vm2894_vm1, %v2893_v3 }
 0x430   : > { %v942_v10 = vpack.c.bf16 %v940_v8, %v940_v8  ;;  %2419 = vmatprep.subr.bf16.mxu1 %v2893_v3 }
 0x432   : > { %2404 = vmatmul.mubr.msk.bf16.vlgmr.msra.gmra.mrb[8].mxu0 %vm821_vm3, %v942_v10 }
 0x433   : > { %2414 = vmatpush3.bf16.xpose.msra.mxu0 %v1100_v11  ;;  %2415 = vmatprep.mubr.msk.bf16.mxu0 %vm2894_vm1, %v2893_v3 }
 0x434   : > { %2425 = vmatprep.subr.bf16.mxu0 %v2893_v3 }
 0x436   : > { %2410 = vmatmul.mubr.msk.bf16.vlgmr.msra.gmra.mrb[8].mxu1 %vm821_vm3, %v1042_v12 }
 0x437   : > { %2421 = vmatprep.mubr.msk.bf16.mxu1 %vm2894_vm1, %v2893_v3 }
 0x43a   : > { %2416 = vmatmul.mubr.msk.bf16.vlgmr.msra.gmra.mrb[12].mxu0 %vm821_vm3, %v1093_v14 }
 0x43b   : > { %2427 = vmatprep.mubr.msk.bf16.mxu0 %vm2894_vm1, %v2893_v3 }
 0x501   : > { %v3361_v15 = vpop.f32.mrb[4].mxu1 }
 0x502   : > { %v2399_v17 = vpop.f32.mrb[5].mxu1 }
 0x503   : > { %v989_v18 = vpop.f32.mrb[6].mxu1 }
 0x504   : > { %v2400_v19 = vpop.f32.mrb[7].mxu1 }
 0x505   : > { %v3363_v20 = vpop.f32.mrb[8].mxu0 }
 0x506   : > { %v2405_v21 = vpop.f32.mrb[9].mxu0 }
 0x507   : > { %v1037_v23 = vpop.f32.mrb[10].mxu0 }
 0x508   : > { %v2406_v25 = vpop.f32.mrb[11].mxu0 }
 0x509   : > { %v1085_v26 = vpop.f32.mrb[8].mxu1 }
 0x50a   : > { %v1142_v27 = vsel %vm741_vm6, -1e+10, %v1085_v26  ;;  %v2411_v28 = vpop.f32.mrb[9].mxu1 }
 0x50b   : > { %v1088_v29 = vpop.f32.mrb[10].mxu1  ;;  %v1144_v30 = vsel %vm821_vm3, %v1142_v27, -inf }
 0x50c   : > { %1145 = vmax.xlane.f32.xlu1 %v1144_v30  ;;  %v2412_v31 = vpop.f32.mrb[11].mxu1 }
 0x50d   : > { %v1136_v33 = vpop.f32.mrb[12].mxu0 }
 0x50e   : > { %v1143_v35 = vsel %vm742_vm7, -1e+10, %v1136_v33  ;;  %v2417_v36 = vpop.f32.mrb[13].mxu0 }
 0x50f   : > { %v1139_v37 = vpop.f32.mrb[14].mxu0  ;;  %v1147_v38 = vsel %vm821_vm3, %v1143_v35, -inf }
 0x510   : > { %1148 = vmax.xlane.f32.xlu0 %v1147_v38  ;;  %v2418_v39 = vpop.f32.mrb[15].mxu0 }
 0x51d   : > { %1168 = vrot.lane.b32.xlu1 %v3293_v13, %s2900_s24 }
 0x521   : > { %1266 = vrot.lane.b32.xlu1 %v3293_v13, %s2901_s14 }
 0x526   : > { %1216 = vrot.lane.b32.xlu0 %v3296_v16, %s2900_s24 }
 0x52a   : > { %1264 = vrot.lane.b32.xlu0 %v3302_v22, %s2902_s0 }
 0x599   : > { %v1146_v40 = vpop.xlane.xlu1 %1145 }
 0x59a   : > { %v1150_v41 = vsub.f32 %v1142_v27, %v1146_v40 }
 0x59c   : > { %v1152_v42 = vmul.f32 1.442695, %v1150_v41 }
 0x59d   : > { %v1169_v43 = vpop.permute.xlu1 %1168  ;;  %v1149_v44 = vpop.xlane.xlu0 %1148 }
 0x59e   : > { %2632 = vpow2.f32 %v1152_v42  ;;  %v1174_v45 = vsel %vm948_vm8, %v1169_v43, 0  ;;  %v1151_v46 = vsub.f32 %v1143_v35, %v1149_v44 }
 0x59f   : > { %2420 = vmatpush3.bf16.msra.mxu1 %v1174_v45 }
 0x5a0   : > { %v1154_v47 = vmul.f32 1.442695, %v1151_v46  ;;  %2431 = vmatprep.subr.bf16.mxu1 %v2893_v3 }
 0x5a1   : > { %v1217_v48 = vpop.permute.xlu0 %1216  ;;  %v1267_v54 = vpop.permute.xlu1 %1266 }
 0x5a2   : > { %2634 = vpow2.f32 %v1154_v47  ;;  %v1222_v49 = vsel %vm948_vm8, %v1217_v48, 0  ;;  %v1272_v61 = vsel %vm821_vm3, %v1267_v54, 0 }
 0x5a3   : > { %2426 = vmatpush3.bf16.msra.mxu0 %v1222_v49 }
 0x5a4   : > { %2437 = vmatprep.subr.bf16.mxu0 %v2893_v3 }
 0x5a5   : > { %v1265_v2 = vpop.permute.xlu0 %1264 }
 0x5a8   : > { %v2633_v50 = vpop.eup %2632 }
 0x5a9   : > { %v1156_v51 = vsel %vm821_vm3, %v2633_v50, 0.0 }
 0x5aa   : > { %1157 = vadd.xlane.f32.xlu1 %v1156_v51 }
 0x5ac   : > { %v2635_v52 = vpop.eup %2634 }
 0x5ad   : > { %v1159_v53 = vsel %vm821_vm3, %v2635_v52, 0.0 }
 0x5ae   : > { %1160 = vadd.xlane.f32.xlu1 %v1159_v53 }
 0x5bf   : > { %1316 = vrot.lane.b32.xlu1 %v3296_v16, %s2901_s14 }
 0x5c3   : > { %1314 = vrot.lane.b32.xlu1 %v3309_v24, %s2902_s0  ;;  %s2910_s0 = smov [#allocation11]  }
 0x637   : > { %v1158_v55 = vpop.xlane.xlu1 %1157 }
 0x638   : > { %2636 = vrcp.f32 %v1158_v55 }
 0x63b   : > { %v1161_v56 = vpop.xlane.xlu1 %1160 }
 0x63c   : > { %2638 = vrcp.f32 %v1161_v56 }
 0x63f   : > { %v1317_v63 = vpop.permute.xlu1 %1316 }
 0x640   : > { %v1322_v1 = vsel %vm821_vm3, %v1317_v63, 0 }
 0x642   : > { %v2637_v57 = vpop.eup %2636 }
 0x643   : > { %v1164_v58 = vmul.f32 %v2637_v57, %v2633_v50  ;;  %v1315_v4 = vpop.permute.xlu1 %1314 }
 0x645   : > { %v1166_v59 = vpack.c.bf16 %v1164_v58, %v1164_v58 }
 0x646   : > { %v2639_v60 = vpop.eup %2638 }
 0x647   : > { %v1165_v62 = vmul.f32 %v2639_v60, %v2635_v52  ;;  %2422 = vmatmul.mubr.msk.bf16.vlgmr.msra.gmra.mrb[12].mxu1 %vm821_vm3, %v1166_v59 }
 0x648   : > { %2432 = vmatpush3.bf16.xpose.msra.mxu1 %v1272_v61  ;;  %2433 = vmatprep.mubr.msk.bf16.mxu1 %vm2894_vm1, %v2893_v3 }
 0x649   : > { %v1167_v0 = vpack.c.bf16 %v1165_v62, %v1165_v62  ;;  %2443 = vmatprep.subr.bf16.mxu1 %v2893_v3 }
 0x64b   : > { %2428 = vmatmul.mubr.msk.bf16.vlgmr.msra.gmra.mrb[16].mxu0 %vm821_vm3, %v1167_v0 }
 0x64c   : > { %2438 = vmatpush3.bf16.xpose.msra.mxu0 %v1322_v1  ;;  %2439 = vmatprep.mubr.msk.bf16.mxu0 %vm2894_vm1, %v2893_v3 }
 0x64d   : > { %2449 = vmatprep.subr.bf16.mxu0 %v2893_v3 }
 0x64f   : > { %2434 = vmatmul.mubr.msk.bf16.vlgmr.msra.gmra.mrb[16].mxu1 %vm821_vm3, %v1265_v2 }
 0x650   : > { %2445 = vmatprep.mubr.msk.bf16.mxu1 %vm2894_vm1, %v2893_v3 }
 0x653   : > { %2440 = vmatmul.mubr.msk.bf16.vlgmr.msra.gmra.mrb[20].mxu0 %vm821_vm3, %v1315_v4 }
 0x654   : > { %2451 = vmatprep.mubr.msk.bf16.mxu0 %vm2894_vm1, %v2893_v3 }
 0x71a   : > { %v3399_v7 = vpop.f32.mrb[12].mxu1 }
 0x71b   : > { %v2423_v8 = vpop.f32.mrb[13].mxu1 }
 0x71c   : > { %v1213_v9 = vpop.f32.mrb[14].mxu1 }
 0x71d   : > { %v2424_v10 = vpop.f32.mrb[15].mxu1 }
 0x71e   : > { %v3401_v11 = vpop.f32.mrb[16].mxu0 }
 0x71f   : > { %v2599_v12 = vpack.i.bf16 %v3401_v11, %v3399_v7  ;;  %v2429_v14 = vpop.f32.mrb[17].mxu0 }
 0x720   : > { %v1261_v17 = vpop.f32.mrb[18].mxu0 }
 0x721   : > { %v2430_v18 = vpop.f32.mrb[19].mxu0 }
 0x722   : > { %v1308_v19 = vpop.f32.mrb[16].mxu1 }
 0x723   : > { %v1364_v21 = vsel %vm741_vm6, -1e+10, %v1308_v19  ;;  %v2435_v23 = vpop.f32.mrb[17].mxu1 }
 0x724   : > { %v1311_v25 = vpop.f32.mrb[18].mxu1  ;;  %v1366_v26 = vsel %vm821_vm3, %v1364_v21, -inf }
 0x725   : > { %1367 = vmax.xlane.f32.xlu0 %v1366_v26  ;;  %v2436_v27 = vpop.f32.mrb[19].mxu1 }
 0x726   : > { %v1358_v28 = vpop.f32.mrb[20].mxu0 }
 0x727   : > { %v1365_v29 = vsel %vm742_vm7, -1e+10, %v1358_v28  ;;  %v2441_v30 = vpop.f32.mrb[21].mxu0 }
 0x728   : > { %v1361_v31 = vpop.f32.mrb[22].mxu0  ;;  %v1369_v33 = vsel %vm821_vm3, %v1365_v29, -inf }
 0x729   : > { %1370 = vmax.xlane.f32.xlu1 %v1369_v33  ;;  %v2442_v35 = vpop.f32.mrb[23].mxu0 }
 0x73a   : > { %1390 = vrot.lane.b32.xlu1 %v3293_v13, %s2903_s2 }
 0x73e   : > { %1488 = vrot.lane.b32.xlu1 %v3293_v13, %s2904_s17 }
 0x742   : > { %1538 = vrot.lane.b32.xlu1 %v3296_v16, %s2904_s17 }
 0x746   : > { %1536 = vrot.lane.b32.xlu1 %v3309_v24, %s2905_s25 }
 0x7b2   : > { %v1368_v36 = vpop.xlane.xlu0 %1367 }
 0x7b3   : > { %v1372_v37 = vsub.f32 %v1364_v21, %v1368_v36 }
 0x7b5   : > { %v1374_v38 = vmul.f32 1.442695, %v1372_v37 }
 0x7b6   : > { %v1371_v39 = vpop.xlane.xlu1 %1370 }
 0x7b7   : > { %2640 = vpow2.f32 %v1374_v38  ;;  %v1373_v40 = vsub.f32 %v1365_v29, %v1371_v39 }
 0x7b9   : > { %v1376_v41 = vmul.f32 1.442695, %v1373_v40 }
 0x7ba   : > { %v1391_v42 = vpop.permute.xlu1 %1390 }
 0x7bb   : > { %2642 = vpow2.f32 %v1376_v41  ;;  %v1396_v43 = vsel %vm948_vm8, %v1391_v42, 0 }
 0x7bc   : > { %2444 = vmatpush3.bf16.msra.mxu1 %v1396_v43 }
 0x7bd   : > { %2455 = vmatprep.subr.bf16.mxu1 %v2893_v3 }
 0x7be   : > { %v1489_v52 = vpop.permute.xlu1 %1488 }
 0x7bf   : > { %v1494_v56 = vsel %vm821_vm3, %v1489_v52, 0 }
 0x7c1   : > { %v2641_v44 = vpop.eup %2640 }
 0x7c2   : > { %v1378_v45 = vsel %vm821_vm3, %v2641_v44, 0.0 }
 0x7c3   : > { %1379 = vadd.xlane.f32.xlu0 %v1378_v45 }
 0x7c5   : > { %v2643_v46 = vpop.eup %2642 }
 0x7c6   : > { %v1381_v24 = vsel %vm821_vm3, %v2643_v46, 0.0 }
 0x7c7   : > { %1382 = vadd.xlane.f32.xlu0 %v1381_v24 }
 0x7dd   : > { %1438 = vrot.lane.b32.xlu0 %v3296_v16, %s2903_s2  ;;  %s2064_s2 = sshll.u32 %s2910_s0, 4  ;;  %s2065_s2 = int_to_ptr.vmem [resolvable:$true] %s2064_s2 }
 0x7de   : > { %p2819_p13 = scmp.lt.s32.totalorder %s2065_s2, %s2065_s2 }
 0x7e1   : > { %1486 = vrot.lane.b32.xlu0 %v3302_v22, %s2905_s25  ;;  %v1539_v22 = vpop.permute.xlu1 %1538 }
 0x7e2   : > { %v1544_v59 = vsel %vm821_vm3, %v1539_v22, 0 }
 0x7e5   : > { %v1537_v61 = vpop.permute.xlu1 %1536 }
 0x850   : > { %v1380_v47 = vpop.xlane.xlu0 %1379 }
 0x851   : > { %2644 = vrcp.f32 %v1380_v47  ;;  %v2616_v47 = vld [vmem:[%s3243_s23] sm:$0xff]  }
 0x854   : > { %v1383_v48 = vpop.xlane.xlu0 %1382 }
 0x855   : > { %2646 = vrcp.f32 %v1383_v48  ;;  %v2617_v48 = vld [vmem:[%s3243_s23 + $0x8] sm:$0xff]   ;;  %s3624_s23 = scalar_lea.vmem [#allocation5], %s3215_s21 }
 0x858   : > { %v1439_v49 = vpop.permute.xlu0 %1438 }
 0x859   : > { %v1444_v50 = vsel %vm948_vm8, %v1439_v49, 0 }
 0x85a   : > { %2450 = vmatpush3.bf16.msra.mxu0 %v1444_v50 }
 0x85b   : > { %v2645_v51 = vpop.eup %2644  ;;  %2461 = vmatprep.subr.bf16.mxu0 %v2893_v3 }
 0x85c   : > { %v1386_v53 = vmul.f32 %v2645_v51, %v2641_v44  ;;  %v1487_v60 = vpop.permute.xlu0 %1486 }
 0x85e   : > { %v1388_v54 = vpack.c.bf16 %v1386_v53, %v1386_v53 }
 0x85f   : > { %v2647_v55 = vpop.eup %2646 }
 0x860   : > { %v1387_v57 = vmul.f32 %v2647_v55, %v2643_v46  ;;  %2446 = vmatmul.mubr.msk.bf16.vlgmr.msra.gmra.mrb[20].mxu1 %vm821_vm3, %v1388_v54 }
 0x861   : > { %2456 = vmatpush3.bf16.xpose.msra.mxu1 %v1494_v56  ;;  %2457 = vmatprep.mubr.msk.bf16.mxu1 %vm2894_vm1, %v2893_v3 }
 0x862   : > { %v1389_v58 = vpack.c.bf16 %v1387_v57, %v1387_v57  ;;  %2467 = vmatprep.subr.bf16.mxu1 %v2893_v3 }
 0x864   : > { %2452 = vmatmul.mubr.msk.bf16.vlgmr.msra.gmra.mrb[24].mxu0 %vm821_vm3, %v1389_v58 }
 0x865   : > { %2462 = vmatpush3.bf16.xpose.msra.mxu0 %v1544_v59  ;;  %2463 = vmatprep.mubr.msk.bf16.mxu0 %vm2894_vm1, %v2893_v3 }
 0x866   : > { %2473 = vmatprep.subr.bf16.mxu0 %v2893_v3 }
 0x868   : > { %2458 = vmatmul.mubr.msk.bf16.vlgmr.msra.gmra.mrb[24].mxu1 %vm821_vm3, %v1487_v60 }
 0x869   : > { %2469 = vmatprep.mubr.msk.bf16.mxu1 %vm2894_vm1, %v2893_v3 }
 0x86c   : > { %2464 = vmatmul.mubr.msk.bf16.vlgmr.msra.gmra.mrb[28].mxu0 %vm821_vm3, %v1537_v61 }
 0x86d   : > { %2475 = vmatprep.mubr.msk.bf16.mxu0 %vm2894_vm1, %v2893_v3 }
 0x933   : > { %v1432_v62 = vpop.f32.mrb[20].mxu1 }
 0x934   : > { %v2447_v63 = vpop.f32.mrb[21].mxu1 }
 0x935   : > { %v1435_v0 = vpop.f32.mrb[22].mxu1 }
 0x936   : > { %v2448_v1 = vpop.f32.mrb[23].mxu1 }
 0x937   : > { %v1480_v2 = vpop.f32.mrb[24].mxu0 }
 0x938   : > { %v2604_v4 = vpack.i.bf16 %v1480_v2, %v1432_v62  ;;  %v2453_v8 = vpop.f32.mrb[25].mxu0 }
 0x939   : > { %v1483_v9 = vpop.f32.mrb[26].mxu0 }
 0x93a   : > { %v2454_v10 = vpop.f32.mrb[27].mxu0 }
 0x93b   : > { %v1530_v14 = vpop.f32.mrb[24].mxu1 }
 0x93c   : > { %v1586_v17 = vsel %vm741_vm6, -1e+10, %v1530_v14  ;;  %v2459_v18 = vpop.f32.mrb[25].mxu1 }
 0x93d   : > { %v1533_v19 = vpop.f32.mrb[26].mxu1  ;;  %v1588_v21 = vsel %vm821_vm3, %v1586_v17, -inf  ;;  %v2303_v18 = vld [vmem:[%s3624_s23] ss:$0 sm:$0xff] }
 0x93e   : > { %1589 = vmax.xlane.f32.xlu0 %v1588_v21  ;;  %v2460_v23 = vpop.f32.mrb[27].mxu1 }
 0x93f   : > { %v1580_v25 = vpop.f32.mrb[28].mxu0 }
 0x940   : > { %v1587_v26 = vsel %vm742_vm7, -1e+10, %v1580_v25  ;;  %v2465_v27 = vpop.f32.mrb[29].mxu0 }
 0x941   : > { %v1583_v28 = vpop.f32.mrb[30].mxu0  ;;  %v1591_v29 = vsel %vm821_vm3, %v1587_v26, -inf }
 0x942   : > { %1592 = vmax.xlane.f32.xlu1 %v1591_v29  ;;  %v2466_v30 = vpop.f32.mrb[31].mxu0 }
 0x953   : > { %1612 = vrot.lane.b32.xlu1 %v3293_v13, %s2906_s19 }
 0x957   : > { %2600 = vrot.lane.b32.xlu1 %v2599_v12, %s2907_s15 }
 0x95b   : > { %2605 = vrot.lane.b32.xlu1 %v2604_v4, %s2908_s29 }
 0x9cb   : > { %v1590_v32 = vpop.xlane.xlu0 %1589 }
 0x9cc   : > { %v1594_v34 = vsub.f32 %v1586_v17, %v1590_v32 }
 0x9ce   : > { %v1596_v31 = vmul.f32 1.442695, %v1594_v34 }
 0x9cf   : > { %v1593_v33 = vpop.xlane.xlu1 %1592 }
 0x9d0   : > { %2648 = vpow2.f32 %v1596_v31  ;;  %v1595_v35 = vsub.f32 %v1587_v26, %v1593_v33 }
 0x9d2   : > { %v1598_v36 = vmul.f32 1.442695, %v1595_v35 }
 0x9d3   : > { %v1613_v37 = vpop.permute.xlu1 %1612 }
 0x9d4   : > { %2650 = vpow2.f32 %v1598_v36  ;;  %v1618_v38 = vsel %vm948_vm8, %v1613_v37, 0 }
 0x9d5   : > { %2468 = vmatpush3.bf16.msra.mxu1 %v1618_v38  ;;  %v2618_v38 = vld [vmem:[%s3248_s16] sm:$0xff]  }
 0x9d6   : > { %2479 = vmatprep.subr.bf16.mxu1 %v2893_v3 }
 0x9d7   : > { %v2601_v22 = vpop.permute.xlu1 %2600 }
 0x9d8   : > { %v2603_v59 = vunpack.i.h.bf16 %v2601_v22  ;;  %v2602_v60 = vunpack.i.l.bf16 %v2601_v22 }
 0x9da   : > { %v2649_v13 = vpop.eup %2648  ;;  %v1733_v0 = vsel %vm821_vm3, %v3363_v20, %v2603_v59  ;;  %v1732_v1 = vsel %vm821_vm3, %v3361_v15, %v2602_v60 }
 0x9db   : > { %v1600_v7 = vsel %vm821_vm3, %v2649_v13, 0.0  ;;  %v2606_v58 = vpop.permute.xlu1 %2605 }
 0x9dc   : > { %1601 = vadd.xlane.f32.xlu0 %v1600_v7  ;;  %v2608_v61 = vunpack.i.h.bf16 %v2606_v58  ;;  %v2607_v62 = vunpack.i.l.bf16 %v2606_v58  ;;  %v2620_v7 = vld [vmem:[%s3254_s11] sm:$0xff]  }
 0x9de   : > { %v2651_v11 = vpop.eup %2650  ;;  %v1735_v8 = vsel %vm1734_vm9, %v1732_v1, %v2607_v62  ;;  %v1736_v9 = vsel %vm1734_vm9, %v1733_v0, %v2608_v61 }
 0x9df   : > { %v1603_v12 = vsel %vm821_vm3, %v2651_v11, 0.0 }
 0x9e0   : > { %1604 = vadd.xlane.f32.xlu0 %v1603_v12 }
 0x9f6   : > { %1660 = vrot.lane.b32.xlu0 %v3296_v16, %s2906_s19 }
 0xa69   : > { %v1602_v39 = vpop.xlane.xlu0 %1601 }
 0xa6a   : > { %2652 = vrcp.f32 %v1602_v39 }
 0xa6d   : > { %v1605_v40 = vpop.xlane.xlu0 %1604 }
 0xa6e   : > { %2654 = vrcp.f32 %v1605_v40 }
 0xa71   : > { %v1661_v41 = vpop.permute.xlu0 %1660 }
 0xa72   : > { %v1666_v42 = vsel %vm948_vm8, %v1661_v41, 0 }
 0xa73   : > { %2474 = vmatpush3.bf16.msra.mxu0 %v1666_v42 }
 0xa74   : > { %v2653_v43 = vpop.eup %2652  ;;  %2487 = vmatprep.subr.bf16.mxu0 %v2893_v3 }
 0xa75   : > { %v1608_v44 = vmul.f32 %v2653_v43, %v2649_v13  ;;  %v2619_v13 = vld [vmem:[%s3248_s16 + $0x8] sm:$0xff]   ;;  %s3625_s16 = scalar_lea.vmem [#allocation7], %s3215_s21 }
 0xa77   : > { %v1610_v45 = vpack.c.bf16 %v1608_v44, %v1608_v44 }
 0xa78   : > { %v2655_v46 = vpop.eup %2654 }
 0xa79   : > { %v1609_v24 = vmul.f32 %v2655_v46, %v2651_v11  ;;  %2470 = vmatmul.mubr.msk.bf16.vlgmr.msra.gmra.mrb[28].mxu1 %vm821_vm3, %v1610_v45  ;;  %v2621_v11 = vld [vmem:[%s3254_s11 + $0x8] sm:$0xff]   ;;  %v2307_v45 = vld [vmem:[%s3625_s16] ss:$0 sm:$0xff] }
 0xa7a   : > { %2483 = vmatprep.mubr.msk.bf16.mxu1 %vm2894_vm1, %v2893_v3  ;;  %2480 = vmatpush3.bf16.msra.mxu1 %v2616_v47 }
 0xa7b   : > { %v1611_v16 = vpack.c.bf16 %v1609_v24, %v1609_v24  ;;  %2481 = vmatprep.subr.bf16.mxu1 %v2893_v3 }
 0xa7d   : > { %2476 = vmatmul.mubr.msk.bf16.vlgmr.msra.gmra.mrb[32].mxu0 %vm821_vm3, %v1611_v16 }
 0xa7e   : > { %2491 = vmatprep.mubr.msk.bf16.mxu0 %vm2894_vm1, %v2893_v3  ;;  %2482 = vmatpush3.bf16.msra.mxu1 %v2617_v48  ;;  %v2308_v48 = vld [vmem:[%s3626_s27] ss:$0 sm:$0xff] }
 0xa7f   : > { %2495 = vmatprep.subr.bf16.mxu1 %v2893_v3  ;;  %2488 = vmatpush3.bf16.msra.mxu0 %v2618_v38  ;;  %v2320_v38 = vld [vmem:[%s714_s20] ss:$0 sm:$0xff] }
 0xa80   : > { %2489 = vmatprep.subr.bf16.mxu0 %v2893_v3 }
 0xa83   : > { %2490 = vmatpush3.bf16.msra.mxu0 %v2619_v13 }
 0xb4c   : > { %v1654_v49 = vpop.f32.mrb[28].mxu1 }
 0xb4d   : > { %v2471_v50 = vpop.f32.mrb[29].mxu1 }
 0xb4e   : > { %v1657_v51 = vpop.f32.mrb[30].mxu1 }
 0xb4f   : > { %v2472_v52 = vpop.f32.mrb[31].mxu1 }
 0xb50   : > { %v1702_v53 = vpop.f32.mrb[32].mxu0 }
 0xb51   : > { %v2609_v54 = vpack.i.bf16 %v1702_v53, %v1654_v49  ;;  %v2477_v55 = vpop.f32.mrb[33].mxu0  ;;  %v2622_v53 = vld [vmem:[%s3254_s11 + $0x10] sm:$0xff]  }
 0xb52   : > { %v1705_v56 = vpop.f32.mrb[34].mxu0  ;;  %v2309_v55 = vld [vmem:[%s600_s10] ss:$0 sm:$0xff] }
 0xb53   : > { %2610 = vrot.lane.b32.xlu0 %v2609_v54, %s2909_s26  ;;  %v2478_v57 = vpop.f32.mrb[35].mxu0  ;;  %v2623_v54 = vld [vmem:[%s3254_s11 + $0x18] sm:$0xff]  }
 0xbc5   : > { %v2611_v63 = vpop.permute.xlu0 %2610 }
 0xbc6   : > { %v2613_v2 = vunpack.i.h.bf16 %v2611_v63  ;;  %v2612_v4 = vunpack.i.l.bf16 %v2611_v63 }
 0xbc8   : > { %v1739_v10 = vsel %vm1737_vm10, %v1736_v9, %v2613_v2  ;;  %v1738_v14 = vsel %vm1737_vm10, %v1735_v8, %v2612_v4 }
 0xbc9   : > { %v1740_v17 = vpack.c.bf16 %v1739_v10, %v1738_v14 }
 0xbcb   : > { %2484 = vmatmul.mubr.msk.bf16.vlgmr.msra.gmra.mrb[32].mxu1 %vm767_vm2, %v1740_v17 }
 0xbcc   : > { %2503 = vmatprep.mubr.msk.bf16.mxu1 %vm2894_vm1, %v2893_v3  ;;  %2496 = vmatpush3.bf16.msra.mxu1 %v2620_v7 }
 0xbcd   : > { %2497 = vmatprep.subr.bf16.mxu1 %v2893_v3 }
 0xbd0   : > { %2498 = vmatpush3.bf16.msra.mxu1 %v2621_v11 }
 0xbd1   : > { %2499 = vmatprep.subr.bf16.mxu1 %v2893_v3 }
 0xbd4   : > { %2500 = vmatpush3.bf16.msra.mxu1 %v2622_v53 }
 0xbd5   : > { %2501 = vmatprep.subr.bf16.mxu1 %v2893_v3  ;;  %v2313_v3 = vld [vmem:[%s708_s12] ss:$0 sm:$0xff] }
 0xbd8   : > { %2502 = vmatpush3.bf16.msra.mxu1 %v2623_v54 }
 0xc9e   : > { %v1801_v19 = vpop.f32.mrb[32].mxu1 }
 0xc9f   : > { %v1802_v21 = vadd.f32 %v2303_v18, %v1801_v19  ;;  %v2485_v20 = vpop.f32.mrb[33].mxu1 }
 0xca0   : > { %v1804_v23 = vpop.f32.mrb[34].mxu1 }
 0xca1   : > { %v1805_v25 = vadd.f32 %v2303_v18, %v1804_v23  ;;  %v2486_v15 = vpop.f32.mrb[35].mxu1  ;;  %v1808_v26 = vadd.f32 %v1802_v21, %v3275_v5 }
 0xca3   : > { %v1812_v27 = vsel %vm767_vm2, %v1808_v26, 0.0  ;;  %v1809_v28 = vadd.f32 %v1805_v25, %v3277_v6 }
 0xca4   : > { %1813 = vadd.xlane.f32.xlu1 %v1812_v27 }
 0xca5   : > { %v1815_v29 = vsel %vm767_vm2, %v1809_v28, 0.0 }
 0xca6   : > { %1816 = vadd.xlane.f32.xlu0 %v1815_v29 }
 0xd31   : > { %v1814_v30 = vpop.xlane.xlu1 %1813 }
 0xd32   : > { %v1819_v32 = vmul.f32 0.03125, %v1814_v30 }
 0xd33   : > { %v1817_v34 = vpop.xlane.xlu0 %1816 }
 0xd34   : > { %v1821_v31 = vsub.f32 %v1808_v26, %v1819_v32  ;;  %v1820_v33 = vmul.f32 0.03125, %v1817_v34 }
 0xd36   : > { %v1822_v35 = vsub.f32 %v1809_v28, %v1820_v33  ;;  %v1823_v36 = vmul.f32 %v1821_v31, %v1821_v31 }
 0xd38   : > { %v1825_v5 = vsel %vm767_vm2, %v1823_v36, 0.0  ;;  %v1824_v37 = vmul.f32 %v1822_v35, %v1822_v35 }
 0xd39   : > { %1826 = vadd.xlane.f32.xlu0 %v1825_v5  ;;  %v2319_v5 = vld [vmem:[%s711_s1] ss:$0 sm:$0xff]  ;;  %s2812_s1 = scalar_lea.vmem %s2065_s2, 256 }
 0xd3a   : > { %v1828_v6 = vsel %vm767_vm2, %v1824_v37, 0.0  ;;  %p2813_p4 = scmp.ne.s32.totalorder %s2065_s2, %s2812_s1  ;;  %p2820_p8 = scmp.lt.s32.totalorder %s2812_s1, %s2812_s1 }
 0xd3b   : > { %1829 = vadd.xlane.f32.xlu1 %v1828_v6 }
 0xd3c   : > { %p2814_p6 = pnand %p2813_p4, %p2543_p10  ;;  %p2821_p0 = por %p2820_p8, %p2819_p13 }
 0xd3e   : > { %p2815_p7 = pneg %p2814_p6 }
 0xd40   : > { %p2822_p5 = pnand %p2821_p0, %p2815_p7 }
 0xdc6   : > { %v1827_v12 = vpop.xlane.xlu0 %1826 }
 0xdc7   : > { %v1831_v39 = vmul.f32 0.03125, %v1827_v12 }
 0xdc8   : > { %v1830_v40 = vpop.xlane.xlu1 %1829 }
 0xdc9   : > { %v1833_v41 = vadd.f32 1e-05, %v1831_v39  ;;  %v1832_v42 = vmul.f32 0.03125, %v1830_v40 }
 0xdcb   : > { %2656 = vrsqrt.f32 %v1833_v41  ;;  %v1834_v43 = vadd.f32 1e-05, %v1832_v42 }
 0xdcd   : > { %2658 = vrsqrt.f32 %v1834_v43 }
 0xdd5   : > { %v2657_v44 = vpop.eup %2656 }
 0xdd6   : > { %v1837_v46 = vmul.f32 %v2657_v44, %v1821_v31 }
 0xdd7   : > { %v2659_v24 = vpop.eup %2658 }
 0xdd8   : > { %v1845_v16 = vmul.f32 %v2307_v45, %v1837_v46  ;;  %v1838_v47 = vmul.f32 %v2659_v24, %v1822_v35 }
 0xdda   : > { %v1846_v49 = vmul.f32 %v2307_v45, %v1838_v47  ;;  %v1853_v50 = vadd.f32 %v2308_v48, %v1845_v16 }
 0xddc   : > { %v1854_v51 = vadd.f32 %v2308_v48, %v1846_v49 }
 0xdde   : > { %v1855_v52 = vpack.c.bf16 %v1854_v51, %v1853_v50 }
 0xde0   : > { %2492 = vmatmul.mubr.msk.bf16.vlgmr.msra.gmra.mrb[36].mxu0 %vm767_vm2, %v1855_v52 }
 0xeb3   : > { %v1916_v56 = vpop.f32.mrb[36].mxu0 }
 0xeb4   : > { %v1917_v57 = vadd.f32 %v2309_v55, %v1916_v56  ;;  %v2493_v22 = vpop.f32.mrb[37].mxu0 }
 0xeb5   : > { %v1919_v58 = vpop.f32.mrb[38].mxu0 }
 0xeb6   : > { %v1920_v59 = vadd.f32 %v2309_v55, %v1919_v58  ;;  %v2494_v60 = vpop.f32.mrb[39].mxu0  ;;  %v1923_v61 = vmax.f32 %v1917_v57, 0.0 }
 0xeb8   : > { %v1924_v62 = vmax.f32 %v1920_v59, 0.0 }
 0xeba   : > { %v1925_v63 = vpack.c.bf16 %v1924_v62, %v1923_v61 }
 0xebc   : > { %2504 = vmatmul.mubr.msk.bf16.vlgmr.msra.gmra.mrb[36].mxu1 %vm1965_vm11, %v1925_v63 }
 0xf8f   : > { %v2003_v0 = vpop.f32.mrb[36].mxu1 }
 0xf90   : > { %v2004_v1 = vadd.f32 %v2313_v3, %v2003_v0  ;;  %v2505_v2 = vpop.f32.mrb[37].mxu1 }
 0xf91   : > { %v2006_v4 = vpop.f32.mrb[38].mxu1 }
 0xf92   : > { %v2007_v8 = vadd.f32 %v2313_v3, %v2006_v4  ;;  %v2506_v9 = vpop.f32.mrb[39].mxu1  ;;  %v2010_v10 = vadd.f32 %v2004_v1, %v1853_v50 }
 0xf94   : > { %v2014_v14 = vsel %vm767_vm2, %v2010_v10, 0.0  ;;  %v2011_v17 = vadd.f32 %v2007_v8, %v1854_v51 }
 0xf95   : > { %2015 = vadd.xlane.f32.xlu0 %v2014_v14 }
 0xf96   : > { %v2017_v18 = vsel %vm767_vm2, %v2011_v17, 0.0 }
 0xf97   : > { %2018 = vadd.xlane.f32.xlu1 %v2017_v18 }
0x1022   : > { %v2016_v19 = vpop.xlane.xlu0 %2015 }
0x1023   : > { %v2020_v21 = vmul.f32 0.03125, %v2016_v19 }
0x1024   : > { %v2019_v20 = vpop.xlane.xlu1 %2018 }
0x1025   : > { %v2022_v23 = vsub.f32 %v2010_v10, %v2020_v21  ;;  %v2021_v25 = vmul.f32 0.03125, %v2019_v20 }
0x1027   : > { %v2023_v15 = vsub.f32 %v2011_v17, %v2021_v25  ;;  %v2024_v26 = vmul.f32 %v2022_v23, %v2022_v23 }
0x1029   : > { %v2026_v27 = vsel %vm767_vm2, %v2024_v26, 0.0  ;;  %v2025_v28 = vmul.f32 %v2023_v15, %v2023_v15 }
0x102a   : > { %2027 = vadd.xlane.f32.xlu0 %v2026_v27 }
0x102b   : > { %v2029_v29 = vsel %vm767_vm2, %v2025_v28, 0.0 }
0x102c   : > { %2030 = vadd.xlane.f32.xlu1 %v2029_v29 }
0x10b7   : > { %v2028_v30 = vpop.xlane.xlu0 %2027 }
0x10b8   : > { %v2032_v32 = vmul.f32 0.03125, %v2028_v30 }
0x10b9   : > { %v2031_v34 = vpop.xlane.xlu1 %2030 }
0x10ba   : > { %v2034_v31 = vadd.f32 1e-05, %v2032_v32  ;;  %v2033_v33 = vmul.f32 0.03125, %v2031_v34 }
0x10bc   : > { %2660 = vrsqrt.f32 %v2034_v31  ;;  %v2035_v35 = vadd.f32 1e-05, %v2033_v33 }
0x10be   : > { %2662 = vrsqrt.f32 %v2035_v35 }
0x10c6   : > { %v2661_v36 = vpop.eup %2660 }
0x10c7   : > { %v2038_v37 = vmul.f32 %v2661_v36, %v2022_v23 }
0x10c8   : > { %v2663_v6 = vpop.eup %2662 }
0x10c9   : > { %v2046_v13 = vmul.f32 %v2319_v5, %v2038_v37  ;;  %v2039_v7 = vmul.f32 %v2663_v6, %v2023_v15 }
0x10cb   : > { %v2047_v11 = vmul.f32 %v2319_v5, %v2039_v7  ;;  %v2054_v12 = vadd.f32 %v2320_v38, %v2046_v13 }
0x10cd   : > { %v2055_v39 = vadd.f32 %v2320_v38, %v2047_v11  ;;  %2056 = vst.msk [vmem:[#allocation11] sm:$0xff] %vm767_vm2, %v2054_v12 }
0x10cf   : > { %2057 = vst.msk [vmem:[#allocation11 + $0x8] sm:$0xff] %vm767_vm2, %v2055_v39 }
0x10d0   : > { %2825 = shalt.err (!%p2822_p5)
}
0x10d1   : > { %s3630_s17 = sld [smem:[#allocation28_spill]] }
0x10d7   : > { %s2826_s25 = scalar_lea.hbm %s3630_s17, 256 }
0x10d8   : > { %p2827_p12 = scmp.ne.s32.totalorder %s3630_s17, %s2826_s25  ;;  %p2832_p1 = scmp.lt.u32.totalorder %s2826_s25, %s3630_s17 }
0x10da   : > { %p2828_p9 = pnand %p2827_p12, %p2543_p10 }
0x10dc   : > { %p2829_p11 = pneg %p2828_p9 }
0x10de   : > { %p2834_p2 = pnand %p2832_p1, %p2829_p11 }
0x10e0   : > { %2837 = shalt.err (!%p2834_p2)
}
0x10e1   : > { %s2911_s16 = smov 128  }
0x10e2   : > { %2520 = dma.vmem_to_hbm [thread:$0]  (%p2543_p10), %s2065_s2, 256, %s3630_s17, [#allocation4], %s2911_s16, %s2911_s16, %s2907_s15  }
0x10e3   : > { %2867 = dma.done.wait (%p2543_p10), [#allocation4], 256  }
0x10e4   : > { %2869 = vsyncadd (%p2543_p10), [#allocation4], 4294967040 }
0x10e5 PF: > { %s3631_s16 = sld [smem:[#allocation17_spill]]  ;;  %s3632_s13 = sld [smem:[#allocation16_spill]] }
0x10e6   : > { %s3633_s15 = sld [smem:[#allocation18_spill]]  ;;  %s3634_s29 = smov %s2876_s30 }
0x10eb   : > { %p29_p3 = scmp.ge.s32.totalorder %s3631_s16, 4   ;;  %s3635_s30 = smov %s3632_s13 }
0x10ed   :  { %31 = sbr.rel (!%p29_p3) target bundleno = 18 (0x12), region = 181 }
0x10f4   :  { %2080 = vsyncpa [#allocation3], 1 }
0x10f5   :  { %2082 = vsyncpa [#allocation3 + $0x1], 1 }
0x10f6   :  { %2083 = vsyncpa [#allocation6], 1 }
0x10f7   :  { %2085 = vsyncpa [#allocation6 + $0x1], 1 }
0x10f8   :  { %2086 = vsyncpa [#allocation9], 1 }
0x10f9   :  { %2088 = vsyncpa [#allocation9 + $0x1], 1 }
0x10fa   :  { %2089 = vsyncpa [#allocation4], 1 }
0x10fb   :  { %2091 = vsyncpa [#allocation4 + $0x1], 1 }

</bundles_post_ra>
